<compile_context>
chip_gen: v7x
topology: tpu7x:2x2x1
jax: 0.10.0
libtpu: 0.0.40
codegen_flags: <defaults>
</compile_context>

<pallas_src>
import jax
import jax.numpy as jnp
from jax.experimental import pallas as pl
from jax.experimental.pallas import tpu as pltpu

LANES = 128       # lane width of a vreg / MXU tile
SUBLANES = 8      # f32 sublane count of a vreg


def _round_up(x, m):
    return ((x + m - 1) // m) * m


# ----------------------------- fused Pallas kernel -------------------------

def _make_fused_kernel(batch, ph1, pw1, k2, n_lin):
    """Fused: conv1+pool+relu -> conv2+pool+relu -> flatten -> MLP.

    Static config: padded batch (multiple of 8), layer-1 pooled spatial
    (ph1, pw1), layer-2 kernel size k2 (layer-2 conv output must pool to
    1x1), n_lin linear layers.
    """
    m1 = ph1 * pw1 * batch           # rows of layer-1 pooled output

    def kernel(*refs):
        p1_ref, w1_ref, w2_ref = refs[0], refs[1], refs[2]
        wl_refs = refs[3:3 + n_lin]
        o_ref = refs[3 + n_lin]

        # ---- layer 1: one stacked matmul over the 4 pooling quadrants ----
        y1 = jnp.dot(p1_ref[...], w1_ref[...],
                     preferred_element_type=jnp.float32)       # (4*m1, Co1p)
        pooled1 = jnp.maximum(jnp.maximum(y1[0:m1], y1[m1:2 * m1]),
                              jnp.maximum(y1[2 * m1:3 * m1], y1[3 * m1:4 * m1]))
        h1 = jnp.maximum(pooled1, 0.0)   # (m1, Co1p); rows ordered (i, j, n)

        # ---- layer 2: in-kernel quadrant im2col + one stacked matmul ----
        # Pooled layer-2 spatial is 1x1, so the 4 conv positions (dh, dw)
        # are exactly the 4 pooling quadrants.  `batch` is a multiple of 8,
        # so every tap slice below is a whole sublane tile (no relayout).
        pos_blocks = []
        for dh in range(2):
            for dw in range(2):
                taps = []
                for kh in range(k2):
                    for kw in range(k2):
                        idx = (dh + kh) * pw1 + (dw + kw)
                        taps.append(h1[idx * batch:(idx + 1) * batch, :])
                pos_blocks.append(jnp.concatenate(taps, axis=1))  # (batch, k2*k2*Co1p)
        p2 = jnp.concatenate(pos_blocks, axis=0).astype(jnp.bfloat16)  # (4*batch, D2)
        y2 = jnp.dot(p2, w2_ref[...], preferred_element_type=jnp.float32)
        pooled2 = jnp.maximum(
            jnp.maximum(y2[0:batch], y2[batch:2 * batch]),
            jnp.maximum(y2[2 * batch:3 * batch], y2[3 * batch:4 * batch]))
        feat = jnp.maximum(pooled2, 0.0)  # (batch, Co2p); == PyTorch flatten
                                          # since the pooled spatial is 1x1.

        # ---- MLP: linear -> (relu -> dropout(identity) -> linear)* ----
        h = jnp.dot(feat.astype(jnp.bfloat16), wl_refs[0][...],
                    preferred_element_type=jnp.float32)
        for i in range(1, n_lin):
            h = jnp.maximum(h, 0.0)
            # TODO(synk): F.dropout(training=True) uses torch RNG; eval-mode
            # identity here (a pltpu.prng_seed/prng_random_bits mask could be
            # added for training-mode equivalence).
            h = jnp.dot(h.astype(jnp.bfloat16), wl_refs[i][...],
                        preferred_element_type=jnp.float32)
        o_ref[...] = h

    return kernel


# ------------------------------ glue (plain JAX) ---------------------------

def _layer1_quadrant_patches(x_nhwc, k, d_pad):
    """Layout glue (slices / concat / pad, no FLOPs).

    Builds the stacked pooling-quadrant im2col patch matrix for a VALID,
    stride-1 kxk conv followed by 2x2 max-pool.
    Returns ((4*PH*PW*N, d_pad), (PH, PW)); rows are quadrant-major, then
    ordered (pooled_row i, pooled_col j, image n).
    """
    n, h, w, c = x_nhwc.shape
    oh, ow = h - k + 1, w - k + 1
    ph, pw = oh // 2, ow // 2
    taps = [x_nhwc[:, kh:kh + oh, kw:kw + ow, :]
            for kh in range(k) for kw in range(k)]
    p = jnp.concatenate(taps, axis=-1)                       # (N, OH, OW, K*K*C)
    p = jnp.pad(p, ((0, 0), (0, 0), (0, 0), (0, d_pad - k * k * c)))
    quads = []
    for dh in range(2):
        for dw in range(2):
            q = p[:, dh::2, dw::2, :][:, :ph, :pw, :]        # (N, PH, PW, Dpad)
            q = jnp.transpose(q, (1, 2, 0, 3)).reshape(ph * pw * n, d_pad)
            quads.append(q)
    return jnp.concatenate(quads, axis=0), (ph, pw)


@jax.jit
def convnet_forward(x_nchw, conv_ws, lin_ws):
    assert len(conv_ws) == 2, "fused kernel is specialized to 2 conv layers"
    w1, w2 = conv_ws
    co1, ci1, k1, _ = w1.shape
    co2, ci2, k2, _ = w2.shape
    n = x_nchw.shape[0]
    nb = _round_up(n, SUBLANES)      # pad batch to a sublane multiple

    x = jnp.transpose(x_nchw, (0, 2, 3, 1)).astype(jnp.float32)  # NCHW -> NHWC
    x = jnp.pad(x, ((0, nb - n), (0, 0), (0, 0), (0, 0)))

    # --- layer-1 stacked quadrant patches (bf16, D zero-padded to 128) ---
    d1 = k1 * k1 * ci1
    d1p = _round_up(d1, LANES)
    p1, (ph1, pw1) = _layer1_quadrant_patches(x, k1, d1p)
    p1 = p1.astype(jnp.bfloat16)

    # Layer-2 conv output must pool to 1x1 so the in-kernel flatten matches
    # PyTorch's (C, H, W) flatten ordering.
    oh2, ow2 = ph1 - k2 + 1, pw1 - k2 + 1
    assert oh2 // 2 == 1 and ow2 // 2 == 1 and oh2 >= 2 and ow2 >= 2

    # --- zero-padded, transposed weight matrices (exact for matmul+max+relu) ---
    co1p = _round_up(co1, LANES)
    w1m = jnp.transpose(w1, (2, 3, 1, 0)).reshape(d1, co1)
    w1m = jnp.pad(w1m, ((0, d1p - d1), (0, co1p - co1))).astype(jnp.bfloat16)

    co2p = _round_up(co2, LANES)
    w2t = jnp.transpose(w2, (2, 3, 1, 0))                    # (k2, k2, ci2, co2)
    w2t = jnp.pad(w2t, ((0, 0), (0, 0), (0, co1p - ci2), (0, co2p - co2)))
    w2m = w2t.reshape(k2 * k2 * co1p, co2p).astype(jnp.bfloat16)

    wlms = []
    fin = co2p                       # padded fan-in of the first linear layer
    for wl in lin_ws:                # F.linear uses x @ W.T
        nout, nin = wl.shape
        noutp = _round_up(nout, LANES)
        wlm = jnp.pad(jnp.transpose(wl), ((0, fin - nin), (0, noutp - nout)))
        wlms.append(wlm.astype(jnp.bfloat16))
        fin = noutp
    nclasses = lin_ws[-1].shape[0]

    kernel = _make_fused_kernel(nb, ph1, pw1, k2, len(lin_ws))
    operands = [p1, w1m, w2m] + wlms
    in_specs = [pl.BlockSpec(op.shape, lambda i: (0, 0)) for op in operands]

    out = pl.pallas_call(
        kernel,
        out_shape=jax.ShapeDtypeStruct((nb, fin), jnp.float32),
        grid=(1,),
        in_specs=in_specs,
        out_specs=pl.BlockSpec((nb, fin), lambda i: (0, 0)),
        compiler_params=pltpu.CompilerParams(
            dimension_semantics=("arbitrary",)),
    )(*operands)
    return out[:n, :nclasses]       # slice padded rows / lanes back out


# --------------------------- pure-JAX reference ----------------------------

def convnet_ref(x_nchw, conv_ws, lin_ws):
    x = x_nchw
    for wt in conv_ws:
        y = jax.lax.conv_general_dilated(
            x, wt, window_strides=(1, 1), padding='VALID',
            dimension_numbers=('NCHW', 'OIHW', 'NCHW'))
        y = jax.lax.reduce_window(
            y, jnp.array(-jnp.inf, y.dtype), jax.lax.max,
            (1, 1, 2, 2), (1, 1, 2, 2), 'VALID')
        x = jnp.maximum(y, 0.0)
    x = x.reshape(x.shape[0], -1)
    x = x @ lin_ws[0].T
    for wt in lin_ws[1:]:
        x = jnp.maximum(x, 0.0) @ wt.T
    return x


# --------------------------------- main ------------------------------------

def kaiming_uniform(key, shape, fan):
    # kaiming_uniform_(a=0, mode='fan_out', nonlinearity='relu'):
    # bound = sqrt(2) * sqrt(3 / fan_out) = sqrt(6 / fan_out)
    bound = (6.0 / fan) ** 0.5
    return jax.random.uniform(key, shape, jnp.float32, -bound, bound)


if __name__ == "__main__":
    # ConvNet(in_size=(4, 16, 16), nclasses=10, channels=[8, 16], units=[32],
    #         kernels=[5, 5], strides=[1, 1], use_bias=False, use_dropout=True)
    key = jax.random.PRNGKey(0)
    kx, kc0, kc1, kl0, kl1 = jax.random.split(key, 5)

    N, Cin, H, W = 2, 4, 16, 16
    nclasses = 10
    x = jax.random.normal(kx, (N, Cin, H, W), jnp.float32)

    # conv stack: (4,16,16) -> conv5 -> (8,12,12) -> pool -> (8,6,6)
    #             -> conv5 -> (16,2,2) -> pool -> (16,1,1)  => flatten 16
    c0 = kaiming_uniform(kc0, (8, 4, 5, 5), fan=8 * 5 * 5)
    c1 = kaiming_uniform(kc1, (16, 8, 5, 5), fan=16 * 5 * 5)
    l0 = kaiming_uniform(kl0, (32, 16), fan=32)
    l1 = kaiming_uniform(kl1, (nclasses, 32), fan=nclasses)
    conv_ws = (c0, c1)
    lin_ws = (l0, l1)

    out = convnet_forward(x, conv_ws, lin_ws)
    out = jax.block_until_ready(out)

    ref = convnet_ref(x, conv_ws, lin_ws)
    assert out.shape == (N, nclasses), out.shape
    assert jnp.allclose(out, ref, rtol=5e-2, atol=5e-2), (
        "max abs diff: %f" % float(jnp.max(jnp.abs(out - ref))))

    print("KERNEL_OK")
</pallas_src>

<mosaic_0001>
module attributes {stable_mosaic.version = 11 : i64} {
  func.func @kernel(%arg0: i32, %arg1: memref<1152x128xbf16, #tpu.memory_space<vmem>>, %arg2: memref<128x128xbf16, #tpu.memory_space<vmem>>, %arg3: memref<3200x128xbf16, #tpu.memory_space<vmem>>, %arg4: memref<128x128xbf16, #tpu.memory_space<vmem>>, %arg5: memref<128x128xbf16, #tpu.memory_space<vmem>>, %arg6: memref<8x128xf32, #tpu.memory_space<vmem>>) attributes {dimension_semantics = [#tpu.dimension_semantics<arbitrary>], iteration_bounds = array<i64: 1>, scalar_prefetch = 0 : i64, scratch_operands = 0 : i64, tpu.core_type = #tpu.core_type<tc>, window_params = [{pipeline_mode = #tpu.pipeline_mode<synchronous>, transform_indices = @transform_0, window_bounds = array<i64: 1152, 128>}, {pipeline_mode = #tpu.pipeline_mode<synchronous>, transform_indices = @transform_1, window_bounds = array<i64: 128, 128>}, {pipeline_mode = #tpu.pipeline_mode<synchronous>, transform_indices = @transform_2, window_bounds = array<i64: 3200, 128>}, {pipeline_mode = #tpu.pipeline_mode<synchronous>, transform_indices = @transform_3, window_bounds = array<i64: 128, 128>}, {pipeline_mode = #tpu.pipeline_mode<synchronous>, transform_indices = @transform_4, window_bounds = array<i64: 128, 128>}, {pipeline_mode = #tpu.pipeline_mode<synchronous>, transform_indices = @transform_5, window_bounds = array<i64: 8, 128>}]} {
    %c0 = arith.constant 0 : index
    %c0_0 = arith.constant 0 : index
    %0 = vector.load %arg1[%c0, %c0_0] : memref<1152x128xbf16, #tpu.memory_space<vmem>>, vector<1152x128xbf16>
    %c0_1 = arith.constant 0 : index
    %c0_2 = arith.constant 0 : index
    %1 = vector.load %arg2[%c0_1, %c0_2] : memref<128x128xbf16, #tpu.memory_space<vmem>>, vector<128x128xbf16>
    %cst = arith.constant dense<0.000000e+00> : vector<1152x128xf32>
    %2 = tpu.matmul %0, %1, %cst {dimension_numbers = #tpu.dot_dimension_numbers<[1], [0], [0], [1], [0, 0, 1, 1], [], []>} : vector<1152x128xbf16>, vector<128x128xbf16>, vector<1152x128xf32> -> vector<1152x128xf32>
    %3 = vector.extract_strided_slice %2 {offsets = [0, 0], sizes = [288, 128], strides = [1, 1]} : vector<1152x128xf32> to vector<288x128xf32>
    %4 = vector.extract_strided_slice %2 {offsets = [288, 0], sizes = [288, 128], strides = [1, 1]} : vector<1152x128xf32> to vector<288x128xf32>
    %5 = arith.maximumf %3, %4 : vector<288x128xf32>
    %6 = vector.extract_strided_slice %2 {offsets = [576, 0], sizes = [288, 128], strides = [1, 1]} : vector<1152x128xf32> to vector<288x128xf32>
    %7 = vector.extract_strided_slice %2 {offsets = [864, 0], sizes = [288, 128], strides = [1, 1]} : vector<1152x128xf32> to vector<288x128xf32>
    %8 = arith.maximumf %6, %7 : vector<288x128xf32>
    %9 = arith.maximumf %5, %8 : vector<288x128xf32>
    %cst_3 = arith.constant 0.000000e+00 : f32
    %10 = vector.broadcast %cst_3 : f32 to vector<288x128xf32>
    %11 = arith.maximumf %9, %10 : vector<288x128xf32>
    %12 = vector.extract_strided_slice %11 {offsets = [0, 0], sizes = [8, 128], strides = [1, 1]} : vector<288x128xf32> to vector<8x128xf32>
    %13 = vector.extract_strided_slice %11 {offsets = [8, 0], sizes = [8, 128], strides = [1, 1]} : vector<288x128xf32> to vector<8x128xf32>
    %14 = vector.extract_strided_slice %11 {offsets = [16, 0], sizes = [8, 128], strides = [1, 1]} : vector<288x128xf32> to vector<8x128xf32>
    %15 = vector.extract_strided_slice %11 {offsets = [24, 0], sizes = [8, 128], strides = [1, 1]} : vector<288x128xf32> to vector<8x128xf32>
    %16 = vector.extract_strided_slice %11 {offsets = [32, 0], sizes = [8, 128], strides = [1, 1]} : vector<288x128xf32> to vector<8x128xf32>
    %17 = vector.extract_strided_slice %11 {offsets = [48, 0], sizes = [8, 128], strides = [1, 1]} : vector<288x128xf32> to vector<8x128xf32>
    %18 = vector.extract_strided_slice %11 {offsets = [56, 0], sizes = [8, 128], strides = [1, 1]} : vector<288x128xf32> to vector<8x128xf32>
    %19 = vector.extract_strided_slice %11 {offsets = [64, 0], sizes = [8, 128], strides = [1, 1]} : vector<288x128xf32> to vector<8x128xf32>
    %20 = vector.extract_strided_slice %11 {offsets = [72, 0], sizes = [8, 128], strides = [1, 1]} : vector<288x128xf32> to vector<8x128xf32>
    %21 = vector.extract_strided_slice %11 {offsets = [80, 0], sizes = [8, 128], strides = [1, 1]} : vector<288x128xf32> to vector<8x128xf32>
    %22 = vector.extract_strided_slice %11 {offsets = [96, 0], sizes = [8, 128], strides = [1, 1]} : vector<288x128xf32> to vector<8x128xf32>
    %23 = vector.extract_strided_slice %11 {offsets = [104, 0], sizes = [8, 128], strides = [1, 1]} : vector<288x128xf32> to vector<8x128xf32>
    %24 = vector.extract_strided_slice %11 {offsets = [112, 0], sizes = [8, 128], strides = [1, 1]} : vector<288x128xf32> to vector<8x128xf32>
    %25 = vector.extract_strided_slice %11 {offsets = [120, 0], sizes = [8, 128], strides = [1, 1]} : vector<288x128xf32> to vector<8x128xf32>
    %26 = vector.extract_strided_slice %11 {offsets = [128, 0], sizes = [8, 128], strides = [1, 1]} : vector<288x128xf32> to vector<8x128xf32>
    %27 = vector.extract_strided_slice %11 {offsets = [144, 0], sizes = [8, 128], strides = [1, 1]} : vector<288x128xf32> to vector<8x128xf32>
    %28 = vector.extract_strided_slice %11 {offsets = [152, 0], sizes = [8, 128], strides = [1, 1]} : vector<288x128xf32> to vector<8x128xf32>
    %29 = vector.extract_strided_slice %11 {offsets = [160, 0], sizes = [8, 128], strides = [1, 1]} : vector<288x128xf32> to vector<8x128xf32>
    %30 = vector.extract_strided_slice %11 {offsets = [168, 0], sizes = [8, 128], strides = [1, 1]} : vector<288x128xf32> to vector<8x128xf32>
    %31 = vector.extract_strided_slice %11 {offsets = [176, 0], sizes = [8, 128], strides = [1, 1]} : vector<288x128xf32> to vector<8x128xf32>
    %32 = vector.extract_strided_slice %11 {offsets = [192, 0], sizes = [8, 128], strides = [1, 1]} : vector<288x128xf32> to vector<8x128xf32>
    %33 = vector.extract_strided_slice %11 {offsets = [200, 0], sizes = [8, 128], strides = [1, 1]} : vector<288x128xf32> to vector<8x128xf32>
    %34 = vector.extract_strided_slice %11 {offsets = [208, 0], sizes = [8, 128], strides = [1, 1]} : vector<288x128xf32> to vector<8x128xf32>
    %35 = vector.extract_strided_slice %11 {offsets = [216, 0], sizes = [8, 128], strides = [1, 1]} : vector<288x128xf32> to vector<8x128xf32>
    %36 = vector.extract_strided_slice %11 {offsets = [224, 0], sizes = [8, 128], strides = [1, 1]} : vector<288x128xf32> to vector<8x128xf32>
    %37 = tpu.concatenate %12, %13, %14, %15, %16, %17, %18, %19, %20, %21, %22, %23, %24, %25, %26, %27 in 1 : vector<8x128xf32>, vector<8x128xf32>, vector<8x128xf32>, vector<8x128xf32>, vector<8x128xf32>, vector<8x128xf32>, vector<8x128xf32>, vector<8x128xf32>, vector<8x128xf32>, vector<8x128xf32>, vector<8x128xf32>, vector<8x128xf32>, vector<8x128xf32>, vector<8x128xf32>, vector<8x128xf32>, vector<8x128xf32> -> vector<8x2048xf32>
    %38 = tpu.concatenate %28, %29, %30, %31, %32, %33, %34, %35, %36 in 1 : vector<8x128xf32>, vector<8x128xf32>, vector<8x128xf32>, vector<8x128xf32>, vector<8x128xf32>, vector<8x128xf32>, vector<8x128xf32>, vector<8x128xf32>, vector<8x128xf32> -> vector<8x1152xf32>
    %39 = tpu.concatenate %37, %38 in 1 : vector<8x2048xf32>, vector<8x1152xf32> -> vector<8x3200xf32>
    %40 = vector.extract_strided_slice %11 {offsets = [8, 0], sizes = [8, 128], strides = [1, 1]} : vector<288x128xf32> to vector<8x128xf32>
    %41 = vector.extract_strided_slice %11 {offsets = [16, 0], sizes = [8, 128], strides = [1, 1]} : vector<288x128xf32> to vector<8x128xf32>
    %42 = vector.extract_strided_slice %11 {offsets = [24, 0], sizes = [8, 128], strides = [1, 1]} : vector<288x128xf32> to vector<8x128xf32>
    %43 = vector.extract_strided_slice %11 {offsets = [32, 0], sizes = [8, 128], strides = [1, 1]} : vector<288x128xf32> to vector<8x128xf32>
    %44 = vector.extract_strided_slice %11 {offsets = [40, 0], sizes = [8, 128], strides = [1, 1]} : vector<288x128xf32> to vector<8x128xf32>
    %45 = vector.extract_strided_slice %11 {offsets = [56, 0], sizes = [8, 128], strides = [1, 1]} : vector<288x128xf32> to vector<8x128xf32>
    %46 = vector.extract_strided_slice %11 {offsets = [64, 0], sizes = [8, 128], strides = [1, 1]} : vector<288x128xf32> to vector<8x128xf32>
    %47 = vector.extract_strided_slice %11 {offsets = [72, 0], sizes = [8, 128], strides = [1, 1]} : vector<288x128xf32> to vector<8x128xf32>
    %48 = vector.extract_strided_slice %11 {offsets = [80, 0], sizes = [8, 128], strides = [1, 1]} : vector<288x128xf32> to vector<8x128xf32>
    %49 = vector.extract_strided_slice %11 {offsets = [88, 0], sizes = [8, 128], strides = [1, 1]} : vector<288x128xf32> to vector<8x128xf32>
    %50 = vector.extract_strided_slice %11 {offsets = [104, 0], sizes = [8, 128], strides = [1, 1]} : vector<288x128xf32> to vector<8x128xf32>
    %51 = vector.extract_strided_slice %11 {offsets = [112, 0], sizes = [8, 128], strides = [1, 1]} : vector<288x128xf32> to vector<8x128xf32>
    %52 = vector.extract_strided_slice %11 {offsets = [120, 0], sizes = [8, 128], strides = [1, 1]} : vector<288x128xf32> to vector<8x128xf32>
    %53 = vector.extract_strided_slice %11 {offsets = [128, 0], sizes = [8, 128], strides = [1, 1]} : vector<288x128xf32> to vector<8x128xf32>
    %54 = vector.extract_strided_slice %11 {offsets = [136, 0], sizes = [8, 128], strides = [1, 1]} : vector<288x128xf32> to vector<8x128xf32>
    %55 = vector.extract_strided_slice %11 {offsets = [152, 0], sizes = [8, 128], strides = [1, 1]} : vector<288x128xf32> to vector<8x128xf32>
    %56 = vector.extract_strided_slice %11 {offsets = [160, 0], sizes = [8, 128], strides = [1, 1]} : vector<288x128xf32> to vector<8x128xf32>
    %57 = vector.extract_strided_slice %11 {offsets = [168, 0], sizes = [8, 128], strides = [1, 1]} : vector<288x128xf32> to vector<8x128xf32>
    %58 = vector.extract_strided_slice %11 {offsets = [176, 0], sizes = [8, 128], strides = [1, 1]} : vector<288x128xf32> to vector<8x128xf32>
    %59 = vector.extract_strided_slice %11 {offsets = [184, 0], sizes = [8, 128], strides = [1, 1]} : vector<288x128xf32> to vector<8x128xf32>
    %60 = vector.extract_strided_slice %11 {offsets = [200, 0], sizes = [8, 128], strides = [1, 1]} : vector<288x128xf32> to vector<8x128xf32>
    %61 = vector.extract_strided_slice %11 {offsets = [208, 0], sizes = [8, 128], strides = [1, 1]} : vector<288x128xf32> to vector<8x128xf32>
    %62 = vector.extract_strided_slice %11 {offsets = [216, 0], sizes = [8, 128], strides = [1, 1]} : vector<288x128xf32> to vector<8x128xf32>
    %63 = vector.extract_strided_slice %11 {offsets = [224, 0], sizes = [8, 128], strides = [1, 1]} : vector<288x128xf32> to vector<8x128xf32>
    %64 = vector.extract_strided_slice %11 {offsets = [232, 0], sizes = [8, 128], strides = [1, 1]} : vector<288x128xf32> to vector<8x128xf32>
    %65 = tpu.concatenate %40, %41, %42, %43, %44, %45, %46, %47, %48, %49, %50, %51, %52, %53, %54, %55 in 1 : vector<8x128xf32>, vector<8x128xf32>, vector<8x128xf32>, vector<8x128xf32>, vector<8x128xf32>, vector<8x128xf32>, vector<8x128xf32>, vector<8x128xf32>, vector<8x128xf32>, vector<8x128xf32>, vector<8x128xf32>, vector<8x128xf32>, vector<8x128xf32>, vector<8x128xf32>, vector<8x128xf32>, vector<8x128xf32> -> vector<8x2048xf32>
    %66 = tpu.concatenate %56, %57, %58, %59, %60, %61, %62, %63, %64 in 1 : vector<8x128xf32>, vector<8x128xf32>, vector<8x128xf32>, vector<8x128xf32>, vector<8x128xf32>, vector<8x128xf32>, vector<8x128xf32>, vector<8x128xf32>, vector<8x128xf32> -> vector<8x1152xf32>
    %67 = tpu.concatenate %65, %66 in 1 : vector<8x2048xf32>, vector<8x1152xf32> -> vector<8x3200xf32>
    %68 = vector.extract_strided_slice %11 {offsets = [48, 0], sizes = [8, 128], strides = [1, 1]} : vector<288x128xf32> to vector<8x128xf32>
    %69 = vector.extract_strided_slice %11 {offsets = [56, 0], sizes = [8, 128], strides = [1, 1]} : vector<288x128xf32> to vector<8x128xf32>
    %70 = vector.extract_strided_slice %11 {offsets = [64, 0], sizes = [8, 128], strides = [1, 1]} : vector<288x128xf32> to vector<8x128xf32>
    %71 = vector.extract_strided_slice %11 {offsets = [72, 0], sizes = [8, 128], strides = [1, 1]} : vector<288x128xf32> to vector<8x128xf32>
    %72 = vector.extract_strided_slice %11 {offsets = [80, 0], sizes = [8, 128], strides = [1, 1]} : vector<288x128xf32> to vector<8x128xf32>
    %73 = vector.extract_strided_slice %11 {offsets = [96, 0], sizes = [8, 128], strides = [1, 1]} : vector<288x128xf32> to vector<8x128xf32>
    %74 = vector.extract_strided_slice %11 {offsets = [104, 0], sizes = [8, 128], strides = [1, 1]} : vector<288x128xf32> to vector<8x128xf32>
    %75 = vector.extract_strided_slice %11 {offsets = [112, 0], sizes = [8, 128], strides = [1, 1]} : vector<288x128xf32> to vector<8x128xf32>
    %76 = vector.extract_strided_slice %11 {offsets = [120, 0], sizes = [8, 128], strides = [1, 1]} : vector<288x128xf32> to vector<8x128xf32>
    %77 = vector.extract_strided_slice %11 {offsets = [128, 0], sizes = [8, 128], strides = [1, 1]} : vector<288x128xf32> to vector<8x128xf32>
    %78 = vector.extract_strided_slice %11 {offsets = [144, 0], sizes = [8, 128], strides = [1, 1]} : vector<288x128xf32> to vector<8x128xf32>
    %79 = vector.extract_strided_slice %11 {offsets = [152, 0], sizes = [8, 128], strides = [1, 1]} : vector<288x128xf32> to vector<8x128xf32>
    %80 = vector.extract_strided_slice %11 {offsets = [160, 0], sizes = [8, 128], strides = [1, 1]} : vector<288x128xf32> to vector<8x128xf32>
    %81 = vector.extract_strided_slice %11 {offsets = [168, 0], sizes = [8, 128], strides = [1, 1]} : vector<288x128xf32> to vector<8x128xf32>
    %82 = vector.extract_strided_slice %11 {offsets = [176, 0], sizes = [8, 128], strides = [1, 1]} : vector<288x128xf32> to vector<8x128xf32>
    %83 = vector.extract_strided_slice %11 {offsets = [192, 0], sizes = [8, 128], strides = [1, 1]} : vector<288x128xf32> to vector<8x128xf32>
    %84 = vector.extract_strided_slice %11 {offsets = [200, 0], sizes = [8, 128], strides = [1, 1]} : vector<288x128xf32> to vector<8x128xf32>
    %85 = vector.extract_strided_slice %11 {offsets = [208, 0], sizes = [8, 128], strides = [1, 1]} : vector<288x128xf32> to vector<8x128xf32>
    %86 = vector.extract_strided_slice %11 {offsets = [216, 0], sizes = [8, 128], strides = [1, 1]} : vector<288x128xf32> to vector<8x128xf32>
    %87 = vector.extract_strided_slice %11 {offsets = [224, 0], sizes = [8, 128], strides = [1, 1]} : vector<288x128xf32> to vector<8x128xf32>
    %88 = vector.extract_strided_slice %11 {offsets = [240, 0], sizes = [8, 128], strides = [1, 1]} : vector<288x128xf32> to vector<8x128xf32>
    %89 = vector.extract_strided_slice %11 {offsets = [248, 0], sizes = [8, 128], strides = [1, 1]} : vector<288x128xf32> to vector<8x128xf32>
    %90 = vector.extract_strided_slice %11 {offsets = [256, 0], sizes = [8, 128], strides = [1, 1]} : vector<288x128xf32> to vector<8x128xf32>
    %91 = vector.extract_strided_slice %11 {offsets = [264, 0], sizes = [8, 128], strides = [1, 1]} : vector<288x128xf32> to vector<8x128xf32>
    %92 = vector.extract_strided_slice %11 {offsets = [272, 0], sizes = [8, 128], strides = [1, 1]} : vector<288x128xf32> to vector<8x128xf32>
    %93 = tpu.concatenate %68, %69, %70, %71, %72, %73, %74, %75, %76, %77, %78, %79, %80, %81, %82, %83 in 1 : vector<8x128xf32>, vector<8x128xf32>, vector<8x128xf32>, vector<8x128xf32>, vector<8x128xf32>, vector<8x128xf32>, vector<8x128xf32>, vector<8x128xf32>, vector<8x128xf32>, vector<8x128xf32>, vector<8x128xf32>, vector<8x128xf32>, vector<8x128xf32>, vector<8x128xf32>, vector<8x128xf32>, vector<8x128xf32> -> vector<8x2048xf32>
    %94 = tpu.concatenate %84, %85, %86, %87, %88, %89, %90, %91, %92 in 1 : vector<8x128xf32>, vector<8x128xf32>, vector<8x128xf32>, vector<8x128xf32>, vector<8x128xf32>, vector<8x128xf32>, vector<8x128xf32>, vector<8x128xf32>, vector<8x128xf32> -> vector<8x1152xf32>
    %95 = tpu.concatenate %93, %94 in 1 : vector<8x2048xf32>, vector<8x1152xf32> -> vector<8x3200xf32>
    %96 = vector.extract_strided_slice %11 {offsets = [56, 0], sizes = [8, 128], strides = [1, 1]} : vector<288x128xf32> to vector<8x128xf32>
    %97 = vector.extract_strided_slice %11 {offsets = [64, 0], sizes = [8, 128], strides = [1, 1]} : vector<288x128xf32> to vector<8x128xf32>
    %98 = vector.extract_strided_slice %11 {offsets = [72, 0], sizes = [8, 128], strides = [1, 1]} : vector<288x128xf32> to vector<8x128xf32>
    %99 = vector.extract_strided_slice %11 {offsets = [80, 0], sizes = [8, 128], strides = [1, 1]} : vector<288x128xf32> to vector<8x128xf32>
    %100 = vector.extract_strided_slice %11 {offsets = [88, 0], sizes = [8, 128], strides = [1, 1]} : vector<288x128xf32> to vector<8x128xf32>
    %101 = vector.extract_strided_slice %11 {offsets = [104, 0], sizes = [8, 128], strides = [1, 1]} : vector<288x128xf32> to vector<8x128xf32>
    %102 = vector.extract_strided_slice %11 {offsets = [112, 0], sizes = [8, 128], strides = [1, 1]} : vector<288x128xf32> to vector<8x128xf32>
    %103 = vector.extract_strided_slice %11 {offsets = [120, 0], sizes = [8, 128], strides = [1, 1]} : vector<288x128xf32> to vector<8x128xf32>
    %104 = vector.extract_strided_slice %11 {offsets = [128, 0], sizes = [8, 128], strides = [1, 1]} : vector<288x128xf32> to vector<8x128xf32>
    %105 = vector.extract_strided_slice %11 {offsets = [136, 0], sizes = [8, 128], strides = [1, 1]} : vector<288x128xf32> to vector<8x128xf32>
    %106 = vector.extract_strided_slice %11 {offsets = [152, 0], sizes = [8, 128], strides = [1, 1]} : vector<288x128xf32> to vector<8x128xf32>
    %107 = vector.extract_strided_slice %11 {offsets = [160, 0], sizes = [8, 128], strides = [1, 1]} : vector<288x128xf32> to vector<8x128xf32>
    %108 = vector.extract_strided_slice %11 {offsets = [168, 0], sizes = [8, 128], strides = [1, 1]} : vector<288x128xf32> to vector<8x128xf32>
    %109 = vector.extract_strided_slice %11 {offsets = [176, 0], sizes = [8, 128], strides = [1, 1]} : vector<288x128xf32> to vector<8x128xf32>
    %110 = vector.extract_strided_slice %11 {offsets = [184, 0], sizes = [8, 128], strides = [1, 1]} : vector<288x128xf32> to vector<8x128xf32>
    %111 = vector.extract_strided_slice %11 {offsets = [200, 0], sizes = [8, 128], strides = [1, 1]} : vector<288x128xf32> to vector<8x128xf32>
    %112 = vector.extract_strided_slice %11 {offsets = [208, 0], sizes = [8, 128], strides = [1, 1]} : vector<288x128xf32> to vector<8x128xf32>
    %113 = vector.extract_strided_slice %11 {offsets = [216, 0], sizes = [8, 128], strides = [1, 1]} : vector<288x128xf32> to vector<8x128xf32>
    %114 = vector.extract_strided_slice %11 {offsets = [224, 0], sizes = [8, 128], strides = [1, 1]} : vector<288x128xf32> to vector<8x128xf32>
    %115 = vector.extract_strided_slice %11 {offsets = [232, 0], sizes = [8, 128], strides = [1, 1]} : vector<288x128xf32> to vector<8x128xf32>
    %116 = vector.extract_strided_slice %11 {offsets = [248, 0], sizes = [8, 128], strides = [1, 1]} : vector<288x128xf32> to vector<8x128xf32>
    %117 = vector.extract_strided_slice %11 {offsets = [256, 0], sizes = [8, 128], strides = [1, 1]} : vector<288x128xf32> to vector<8x128xf32>
    %118 = vector.extract_strided_slice %11 {offsets = [264, 0], sizes = [8, 128], strides = [1, 1]} : vector<288x128xf32> to vector<8x128xf32>
    %119 = vector.extract_strided_slice %11 {offsets = [272, 0], sizes = [8, 128], strides = [1, 1]} : vector<288x128xf32> to vector<8x128xf32>
    %120 = vector.extract_strided_slice %11 {offsets = [280, 0], sizes = [8, 128], strides = [1, 1]} : vector<288x128xf32> to vector<8x128xf32>
    %121 = tpu.concatenate %96, %97, %98, %99, %100, %101, %102, %103, %104, %105, %106, %107, %108, %109, %110, %111 in 1 : vector<8x128xf32>, vector<8x128xf32>, vector<8x128xf32>, vector<8x128xf32>, vector<8x128xf32>, vector<8x128xf32>, vector<8x128xf32>, vector<8x128xf32>, vector<8x128xf32>, vector<8x128xf32>, vector<8x128xf32>, vector<8x128xf32>, vector<8x128xf32>, vector<8x128xf32>, vector<8x128xf32>, vector<8x128xf32> -> vector<8x2048xf32>
    %122 = tpu.concatenate %112, %113, %114, %115, %116, %117, %118, %119, %120 in 1 : vector<8x128xf32>, vector<8x128xf32>, vector<8x128xf32>, vector<8x128xf32>, vector<8x128xf32>, vector<8x128xf32>, vector<8x128xf32>, vector<8x128xf32>, vector<8x128xf32> -> vector<8x1152xf32>
    %123 = tpu.concatenate %121, %122 in 1 : vector<8x2048xf32>, vector<8x1152xf32> -> vector<8x3200xf32>
    %124 = tpu.concatenate %39, %67, %95, %123 in 0 : vector<8x3200xf32>, vector<8x3200xf32>, vector<8x3200xf32>, vector<8x3200xf32> -> vector<32x3200xf32>
    %125 = arith.truncf %124 : vector<32x3200xf32> to vector<32x3200xbf16>
    %c0_4 = arith.constant 0 : index
    %c0_5 = arith.constant 0 : index
    %126 = vector.load %arg3[%c0_4, %c0_5] : memref<3200x128xbf16, #tpu.memory_space<vmem>>, vector<3200x128xbf16>
    %cst_6 = arith.constant dense<0.000000e+00> : vector<32x128xf32>
    %127 = tpu.matmul %125, %126, %cst_6 {dimension_numbers = #tpu.dot_dimension_numbers<[1], [0], [0], [1], [0, 0, 1, 1], [], []>} : vector<32x3200xbf16>, vector<3200x128xbf16>, vector<32x128xf32> -> vector<32x128xf32>
    %128 = vector.extract_strided_slice %127 {offsets = [0, 0], sizes = [8, 128], strides = [1, 1]} : vector<32x128xf32> to vector<8x128xf32>
    %129 = vector.extract_strided_slice %127 {offsets = [8, 0], sizes = [8, 128], strides = [1, 1]} : vector<32x128xf32> to vector<8x128xf32>
    %130 = arith.maximumf %128, %129 : vector<8x128xf32>
    %131 = vector.extract_strided_slice %127 {offsets = [16, 0], sizes = [8, 128], strides = [1, 1]} : vector<32x128xf32> to vector<8x128xf32>
    %132 = vector.extract_strided_slice %127 {offsets = [24, 0], sizes = [8, 128], strides = [1, 1]} : vector<32x128xf32> to vector<8x128xf32>
    %133 = arith.maximumf %131, %132 : vector<8x128xf32>
    %134 = arith.maximumf %130, %133 : vector<8x128xf32>
    %cst_7 = arith.constant 0.000000e+00 : f32
    %135 = vector.broadcast %cst_7 : f32 to vector<8x128xf32>
    %136 = arith.maximumf %134, %135 : vector<8x128xf32>
    %137 = arith.truncf %136 : vector<8x128xf32> to vector<8x128xbf16>
    %c0_8 = arith.constant 0 : index
    %c0_9 = arith.constant 0 : index
    %138 = vector.load %arg4[%c0_8, %c0_9] : memref<128x128xbf16, #tpu.memory_space<vmem>>, vector<128x128xbf16>
    %cst_10 = arith.constant dense<0.000000e+00> : vector<8x128xf32>
    %139 = tpu.matmul %137, %138, %cst_10 {dimension_numbers = #tpu.dot_dimension_numbers<[1], [0], [0], [1], [0, 0, 1, 1], [], []>} : vector<8x128xbf16>, vector<128x128xbf16>, vector<8x128xf32> -> vector<8x128xf32>
    %cst_11 = arith.constant 0.000000e+00 : f32
    %140 = vector.broadcast %cst_11 : f32 to vector<8x128xf32>
    %141 = arith.maximumf %139, %140 : vector<8x128xf32>
    %142 = arith.truncf %141 : vector<8x128xf32> to vector<8x128xbf16>
    %c0_12 = arith.constant 0 : index
    %c0_13 = arith.constant 0 : index
    %143 = vector.load %arg5[%c0_12, %c0_13] : memref<128x128xbf16, #tpu.memory_space<vmem>>, vector<128x128xbf16>
    %cst_14 = arith.constant dense<0.000000e+00> : vector<8x128xf32>
    %144 = tpu.matmul %142, %143, %cst_14 {dimension_numbers = #tpu.dot_dimension_numbers<[1], [0], [0], [1], [0, 0, 1, 1], [], []>} : vector<8x128xbf16>, vector<128x128xbf16>, vector<8x128xf32> -> vector<8x128xf32>
    %c0_15 = arith.constant 0 : index
    %c0_16 = arith.constant 0 : index
    %145 = vector.load %arg6[%c0_15, %c0_16] : memref<8x128xf32, #tpu.memory_space<vmem>>, vector<8x128xf32>
    tpu.vector_store %arg6[%c0_15, %c0_16], %144 {strides = array<i32>} : memref<8x128xf32, #tpu.memory_space<vmem>>, vector<8x128xf32>,
    return
  }
  func.func @transform_0(%arg0: i32) -> (i32, i32) {
    %c0_i32 = arith.constant 0 : i32
    %c0_i32_0 = arith.constant 0 : i32
    %c0_i32_1 = arith.constant 0 : i32
    return %c0_i32, %c0_i32_0 : i32, i32
  }
  func.func @transform_1(%arg0: i32) -> (i32, i32) {
    %c0_i32 = arith.constant 0 : i32
    %c0_i32_0 = arith.constant 0 : i32
    %c0_i32_1 = arith.constant 0 : i32
    return %c0_i32, %c0_i32_0 : i32, i32
  }
  func.func @transform_2(%arg0: i32) -> (i32, i32) {
    %c0_i32 = arith.constant 0 : i32
    %c0_i32_0 = arith.constant 0 : i32
    %c0_i32_1 = arith.constant 0 : i32
    return %c0_i32, %c0_i32_0 : i32, i32
  }
  func.func @transform_3(%arg0: i32) -> (i32, i32) {
    %c0_i32 = arith.constant 0 : i32
    %c0_i32_0 = arith.constant 0 : i32
    %c0_i32_1 = arith.constant 0 : i32
    return %c0_i32, %c0_i32_0 : i32, i32
  }
  func.func @transform_4(%arg0: i32) -> (i32, i32) {
    %c0_i32 = arith.constant 0 : i32
    %c0_i32_0 = arith.constant 0 : i32
    %c0_i32_1 = arith.constant 0 : i32
    return %c0_i32, %c0_i32_0 : i32, i32
  }
  func.func @transform_5(%arg0: i32) -> (i32, i32) {
    %c0_i32 = arith.constant 0 : i32
    %c0_i32_0 = arith.constant 0 : i32
    %c0_i32_1 = arith.constant 0 : i32
    return %c0_i32, %c0_i32_0 : i32, i32
  }
}

</mosaic_0001>

<bundles_post_ra>
// kernel: convnet_forward.1
= control target key start
LH: loop header
LB: loop body
LE: loop exit
PB: predicated region body
PF: predicated region fallthrough
CT: control target
= control target key end

     0   :  { %vm5160_vm0 = vmmov 0   ;;  %s6641_s1 = inlined_call_operand.vmem [shape: bf16[128,128], index: 1, kind: input, shape index: {}]   ;;  %s6642_s0 = inlined_call_operand.vmem [shape: bf16[1152,128], index: 0, kind: input, shape index: {}]   ;;  %s6643_s2 = inlined_call_operand.vmem [shape: bf16[3200,128], index: 2, kind: input, shape index: {}]   ;;  %s6644_s3 = inlined_call_operand.vmem [shape: bf16[128,128], index: 3, kind: input, shape index: {}]   ;;  %s6645_s4 = inlined_call_operand.vmem [shape: bf16[128,128], index: 4, kind: input, shape index: {}]   ;;  %s6646_s5 = inlined_call_operand.vmem [shape: f32[8,128], index: 5, kind: output, shape index: {}]  }
   0x1   :  { %v4863_v0 = vld [vmem:[%s6641_s1] sm:$0xff]   ;;  %v4864_v1 = vld [vmem:[%s6641_s1 + $0x8] sm:$0xff]   ;;  %v4865_v2 = vld [vmem:[%s6641_s1 + $0x10] sm:$0xff]  }
   0x2   :  { %4641 = vmatprep.subr.bf16.mxu0 %v4863_v0  ;;  %v4866_v3 = vld [vmem:[%s6641_s1 + $0x18] sm:$0xff]   ;;  %v4871_v4 = vld [vmem:[%s6642_s0] sm:$0xff]   ;;  %v4868_v6 = vld [vmem:[%s6641_s1 + $0x28] sm:$0xff]  }
   0x3   :  { %4642 = vmatpush3.bf16.msra.mxu0 %v4863_v0  ;;  %4657 = vmatprep.mubr.bf16.mxu0 %v4871_v4  ;;  %v4867_v5 = vld [vmem:[%s6641_s1 + $0x20] sm:$0xff]   ;;  %v4869_v7 = vld [vmem:[%s6641_s1 + $0x30] sm:$0xff]   ;;  %v4870_v8 = vld [vmem:[%s6641_s1 + $0x38] sm:$0xff]  }
   0x4   :  { %4643 = vmatprep.subr.bf16.mxu0 %v4864_v1  ;;  %v4872_v9 = vld [vmem:[%s6642_s0 + $0x8] sm:$0xff]   ;;  %v4873_v10 = vld [vmem:[%s6642_s0 + $0x10] sm:$0xff]   ;;  %v4874_v11 = vld [vmem:[%s6642_s0 + $0x18] sm:$0xff]  }
   0x5   :  { %v4875_v12 = vld [vmem:[%s6642_s0 + $0x20] sm:$0xff]   ;;  %v4876_v13 = vld [vmem:[%s6642_s0 + $0x28] sm:$0xff]   ;;  %v4877_v14 = vld [vmem:[%s6642_s0 + $0x30] sm:$0xff]  }
   0x6   :  { %v4878_v15 = vld [vmem:[%s6642_s0 + $0x38] sm:$0xff]   ;;  %v4879_v16 = vld [vmem:[%s6642_s0 + $0x40] sm:$0xff]   ;;  %v4880_v17 = vld [vmem:[%s6642_s0 + $0x48] sm:$0xff]  }
   0x7   :  { %4644 = vmatpush3.bf16.msra.mxu0 %v4864_v1  ;;  %v4881_v18 = vld [vmem:[%s6642_s0 + $0x50] sm:$0xff]   ;;  %v4882_v19 = vld [vmem:[%s6642_s0 + $0x58] sm:$0xff]   ;;  %v4883_v20 = vld [vmem:[%s6642_s0 + $0x60] sm:$0xff]  }
   0x8   :  { %4645 = vmatprep.subr.bf16.mxu0 %v4865_v2  ;;  %v4884_v21 = vld [vmem:[%s6642_s0 + $0x68] sm:$0xff]   ;;  %v4885_v22 = vld [vmem:[%s6642_s0 + $0x70] sm:$0xff]   ;;  %v4886_v23 = vld [vmem:[%s6642_s0 + $0x78] sm:$0xff]  }
   0x9   :  { %v4887_v24 = vld [vmem:[%s6642_s0 + $0x80] sm:$0xff]   ;;  %v4888_v25 = vld [vmem:[%s6642_s0 + $0x88] sm:$0xff]   ;;  %v4889_v26 = vld [vmem:[%s6642_s0 + $0x90] sm:$0xff]  }
   0xa   :  { %v4890_v27 = vld [vmem:[%s6642_s0 + $0x98] sm:$0xff]   ;;  %v4891_v28 = vld [vmem:[%s6642_s0 + $0xa0] sm:$0xff]   ;;  %v4892_v29 = vld [vmem:[%s6642_s0 + $0xa8] sm:$0xff]  }
   0xb   :  { %4646 = vmatpush3.bf16.msra.mxu0 %v4865_v2  ;;  %v4893_v30 = vld [vmem:[%s6642_s0 + $0xb0] sm:$0xff]   ;;  %v4894_v31 = vld [vmem:[%s6642_s0 + $0xb8] sm:$0xff]   ;;  %v4895_v32 = vld [vmem:[%s6642_s0 + $0xc0] sm:$0xff]  }
   0xc   :  { %4647 = vmatprep.subr.bf16.mxu0 %v4866_v3  ;;  %v4896_v33 = vld [vmem:[%s6642_s0 + $0xc8] sm:$0xff]   ;;  %v4897_v34 = vld [vmem:[%s6642_s0 + $0xd0] sm:$0xff]   ;;  %v4898_v35 = vld [vmem:[%s6642_s0 + $0xd8] sm:$0xff]  }
   0xd   :  { %v4899_v36 = vld [vmem:[%s6642_s0 + $0xe0] sm:$0xff]   ;;  %v4900_v37 = vld [vmem:[%s6642_s0 + $0xe8] sm:$0xff]   ;;  %v4901_v38 = vld [vmem:[%s6642_s0 + $0xf0] sm:$0xff]  }
   0xe   :  { %v4902_v39 = vld [vmem:[%s6642_s0 + $0xf8] sm:$0xff]   ;;  %v4903_v40 = vld [vmem:[%s6642_s0 + $0x100] sm:$0xff]   ;;  %v4904_v41 = vld [vmem:[%s6642_s0 + $0x108] sm:$0xff]  }
   0xf   :  { %4648 = vmatpush3.bf16.msra.mxu0 %v4866_v3  ;;  %v4905_v42 = vld [vmem:[%s6642_s0 + $0x110] sm:$0xff]   ;;  %v4906_v43 = vld [vmem:[%s6642_s0 + $0x118] sm:$0xff]   ;;  %v4907_v44 = vld [vmem:[%s6642_s0 + $0x120] sm:$0xff]  }
  0x10   :  { %4649 = vmatprep.subr.bf16.mxu0 %v4867_v5  ;;  %v4908_v45 = vld [vmem:[%s6642_s0 + $0x128] sm:$0xff]   ;;  %v4909_v46 = vld [vmem:[%s6642_s0 + $0x130] sm:$0xff]   ;;  %v4910_v47 = vld [vmem:[%s6642_s0 + $0x138] sm:$0xff]  }
  0x11   :  { %v4911_v48 = vld [vmem:[%s6642_s0 + $0x140] sm:$0xff]   ;;  %v4912_v49 = vld [vmem:[%s6642_s0 + $0x148] sm:$0xff]   ;;  %v4913_v50 = vld [vmem:[%s6642_s0 + $0x150] sm:$0xff]  }
  0x12   :  { %v4914_v51 = vld [vmem:[%s6642_s0 + $0x158] sm:$0xff]   ;;  %v4915_v52 = vld [vmem:[%s6642_s0 + $0x160] sm:$0xff]   ;;  %v4916_v53 = vld [vmem:[%s6642_s0 + $0x168] sm:$0xff]  }
  0x13   :  { %4650 = vmatpush3.bf16.msra.mxu0 %v4867_v5  ;;  %v4917_v54 = vld [vmem:[%s6642_s0 + $0x170] sm:$0xff]   ;;  %v4918_v55 = vld [vmem:[%s6642_s0 + $0x178] sm:$0xff]   ;;  %v4919_v56 = vld [vmem:[%s6642_s0 + $0x180] sm:$0xff]  }
  0x14   :  { %4651 = vmatprep.subr.bf16.mxu0 %v4868_v6  ;;  %v4920_v57 = vld [vmem:[%s6642_s0 + $0x188] sm:$0xff]   ;;  %v4921_v58 = vld [vmem:[%s6642_s0 + $0x190] sm:$0xff]   ;;  %v4922_v59 = vld [vmem:[%s6642_s0 + $0x198] sm:$0xff]  }
  0x15   :  { %v4923_v60 = vld [vmem:[%s6642_s0 + $0x1a0] sm:$0xff]   ;;  %v4924_v61 = vld [vmem:[%s6642_s0 + $0x1a8] sm:$0xff]   ;;  %v4925_v62 = vld [vmem:[%s6642_s0 + $0x1b0] sm:$0xff]  }
  0x16   :  { %v4926_v1 = vld [vmem:[%s6642_s0 + $0x1b8] sm:$0xff]   ;;  %v4927_v3 = vld [vmem:[%s6642_s0 + $0x1c0] sm:$0xff]  }
  0x17   :  { %4652 = vmatpush3.bf16.msra.mxu0 %v4868_v6 }
  0x18   :  { %4653 = vmatprep.subr.bf16.mxu0 %v4869_v7 }
  0x1b   :  { %4654 = vmatpush3.bf16.msra.mxu0 %v4869_v7  ;;  %v4928_v7 = vld [vmem:[%s6642_s0 + $0x1c8] sm:$0xff]  }
  0x1c   :  { %4655 = vmatprep.subr.bf16.mxu0 %v4870_v8 }
  0x1f   :  { %4656 = vmatpush3.bf16.msra.mxu0 %v4870_v8 }
  0x22   :  { %4658 = vmatmul.mubr.bf16.vlgmr.msra.gmra.mrb[0].mxu0 %v4872_v9  ;;  %v4929_v9 = vld [vmem:[%s6642_s0 + $0x1d0] sm:$0xff]  }
  0x23   :  { %4661 = vmatprep.mubr.bf16.mxu0 %v4873_v10 }
  0x2a   :  { %4662 = vmatmul.mubr.bf16.gmra.mrb[4].mxu0 %v4874_v11 }
  0x2b   :  { %4665 = vmatprep.mubr.bf16.mxu0 %v4875_v12 }
  0x32   :  { %4666 = vmatmul.mubr.bf16.gmra.mrb[8].mxu0 %v4876_v13  ;;  %v4930_v13 = vld [vmem:[%s6642_s0 + $0x1d8] sm:$0xff]  }
  0x33   :  { %4669 = vmatprep.mubr.bf16.mxu0 %v4877_v14 }
  0x3a   :  { %4670 = vmatmul.mubr.bf16.gmra.mrb[12].mxu0 %v4878_v15  ;;  %v4931_v15 = vld [vmem:[%s6642_s0 + $0x1e0] sm:$0xff]  }
  0x3b   :  { %4673 = vmatprep.mubr.bf16.mxu0 %v4879_v16 }
  0x42   :  { %4674 = vmatmul.mubr.bf16.gmra.mrb[16].mxu0 %v4880_v17 }
  0x43   :  { %4677 = vmatprep.mubr.bf16.mxu0 %v4881_v18 }
  0x4a   :  { %4678 = vmatmul.mubr.bf16.gmra.mrb[20].mxu0 %v4882_v19  ;;  %v4932_v19 = vld [vmem:[%s6642_s0 + $0x1e8] sm:$0xff]  }
  0x4b   :  { %4681 = vmatprep.mubr.bf16.mxu0 %v4883_v20 }
  0x52   :  { %4682 = vmatmul.mubr.bf16.gmra.mrb[24].mxu0 %v4884_v21  ;;  %v4933_v21 = vld [vmem:[%s6642_s0 + $0x1f0] sm:$0xff]  }
  0x53   :  { %4685 = vmatprep.mubr.bf16.mxu0 %v4885_v22 }
  0x5a   :  { %4686 = vmatmul.mubr.bf16.gmra.mrb[28].mxu0 %v4886_v23 }
  0x5b   :  { %4689 = vmatprep.mubr.bf16.mxu0 %v4887_v24 }
  0x62   :  { %4690 = vmatmul.mubr.bf16.gmra.mrb[32].mxu0 %v4888_v25  ;;  %v4934_v25 = vld [vmem:[%s6642_s0 + $0x1f8] sm:$0xff]  }
  0x63   :  { %4693 = vmatprep.mubr.bf16.mxu0 %v4889_v26 }
  0x6a   :  { %4694 = vmatmul.mubr.bf16.gmra.mrb[36].mxu0 %v4890_v27  ;;  %v4935_v27 = vld [vmem:[%s6642_s0 + $0x200] sm:$0xff]  }
  0x6b   :  { %4697 = vmatprep.mubr.bf16.mxu0 %v4891_v28 }
  0x72   :  { %4698 = vmatmul.mubr.bf16.gmra.mrb[40].mxu0 %v4892_v29 }
  0x73   :  { %4701 = vmatprep.mubr.bf16.mxu0 %v4893_v30 }
  0x7a   :  { %4702 = vmatmul.mubr.bf16.gmra.mrb[44].mxu0 %v4894_v31  ;;  %v4936_v31 = vld [vmem:[%s6642_s0 + $0x208] sm:$0xff]  }
  0x7b   :  { %4705 = vmatprep.mubr.bf16.mxu0 %v4895_v32 }
  0x82   :  { %4706 = vmatmul.mubr.bf16.gmra.mrb[48].mxu0 %v4896_v33  ;;  %v4937_v33 = vld [vmem:[%s6642_s0 + $0x210] sm:$0xff]  }
  0x83   :  { %4709 = vmatprep.mubr.bf16.mxu0 %v4897_v34 }
  0x8a   :  { %4710 = vmatmul.mubr.bf16.gmra.mrb[52].mxu0 %v4898_v35 }
  0x8b   :  { %4713 = vmatprep.mubr.bf16.mxu0 %v4899_v36 }
  0x92   :  { %4714 = vmatmul.mubr.bf16.gmra.mrb[56].mxu0 %v4900_v37  ;;  %v4938_v37 = vld [vmem:[%s6642_s0 + $0x218] sm:$0xff]  }
  0x93   :  { %4717 = vmatprep.mubr.bf16.mxu0 %v4901_v38 }
  0x9a   :  { %4718 = vmatmul.mubr.bf16.gmra.mrb[60].mxu0 %v4902_v39  ;;  %v4939_v39 = vld [vmem:[%s6642_s0 + $0x220] sm:$0xff]  }
  0x9b   :  { %4721 = vmatprep.mubr.bf16.mxu0 %v4903_v40 }
  0xa2   :  { %4722 = vmatmul.mubr.bf16.gmra.mrb[64].mxu0 %v4904_v41 }
  0xa3   :  { %4725 = vmatprep.mubr.bf16.mxu0 %v4905_v42 }
  0xaa   :  { %4726 = vmatmul.mubr.bf16.gmra.mrb[68].mxu0 %v4906_v43  ;;  %v4940_v43 = vld [vmem:[%s6642_s0 + $0x228] sm:$0xff]  }
  0xab   :  { %4729 = vmatprep.mubr.bf16.mxu0 %v4907_v44 }
  0xb2   :  { %4730 = vmatmul.mubr.bf16.gmra.mrb[72].mxu0 %v4908_v45  ;;  %v4941_v45 = vld [vmem:[%s6642_s0 + $0x230] sm:$0xff]  }
  0xb3   :  { %4733 = vmatprep.mubr.bf16.mxu0 %v4909_v46 }
  0xba   :  { %4734 = vmatmul.mubr.bf16.gmra.mrb[76].mxu0 %v4910_v47 }
  0xbb   :  { %4737 = vmatprep.mubr.bf16.mxu0 %v4911_v48 }
  0xc2   :  { %4738 = vmatmul.mubr.bf16.gmra.mrb[80].mxu0 %v4912_v49  ;;  %v4942_v49 = vld [vmem:[%s6642_s0 + $0x238] sm:$0xff]  }
  0xc3   :  { %4741 = vmatprep.mubr.bf16.mxu0 %v4913_v50 }
  0xca   :  { %4742 = vmatmul.mubr.bf16.gmra.mrb[84].mxu0 %v4914_v51  ;;  %v4943_v51 = vld [vmem:[%s6643_s2 + $0x40] sm:$0xff]  }
  0xcb   :  { %4745 = vmatprep.mubr.bf16.mxu0 %v4915_v52  ;;  %4277 = vmatprep.subr.bf16.mxu1 %v4943_v51 }
  0xd2   :  { %4746 = vmatmul.mubr.bf16.gmra.mrb[88].mxu0 %v4916_v53  ;;  %v4944_v53 = vld [vmem:[%s6643_s2] sm:$0xff]  }
  0xd3   :  { %4749 = vmatprep.mubr.bf16.mxu0 %v4917_v54  ;;  %4278 = vmatpush3.bf16.msra.mxu1 %v4944_v53  ;;  %v4945_v54 = vld [vmem:[%s6643_s2 + $0x48] sm:$0xff]  }
  0xd4   :  { %4279 = vmatprep.subr.bf16.mxu1 %v4945_v54 }
  0xda   :  { %4750 = vmatmul.mubr.bf16.gmra.mrb[92].mxu0 %v4918_v55  ;;  %v4946_v55 = vld [vmem:[%s6643_s2 + $0x8] sm:$0xff]  }
  0xdb   :  { %4753 = vmatprep.mubr.bf16.mxu0 %v4919_v56  ;;  %4280 = vmatpush3.bf16.msra.mxu1 %v4946_v55  ;;  %v4954_v55 = vld [vmem:[%s6643_s2 + $0x4c0] sm:$0xff]  }
  0xdc   :  { %4529 = vmatprep.subr.bf16.mxu0 %v4954_v55  ;;  %v4960_v55 = vld [vmem:[%s6643_s2 + $0x38] sm:$0xff]  }
  0xe2   :  { %4754 = vmatmul.mubr.bf16.gmra.mrb[96].mxu0 %v4920_v57  ;;  %v4971_v57 = vld [vmem:[%s6643_s2 + $0x4d0] sm:$0xff]  }
  0xe3   :  { %4757 = vmatprep.mubr.bf16.mxu0 %v4921_v58 }
  0xea   :  { %4758 = vmatmul.mubr.bf16.gmra.mrb[100].mxu0 %v4922_v59 }
  0xeb   :  { %4761 = vmatprep.mubr.bf16.mxu0 %v4923_v60 }
  0xf2   :  { %4762 = vmatmul.mubr.bf16.gmra.mrb[104].mxu0 %v4924_v61  ;;  %v4947_v61 = vld [vmem:[%s6643_s2 + $0x50] sm:$0xff]  }
  0xf3   :  { %4765 = vmatprep.mubr.bf16.mxu0 %v4925_v62  ;;  %4281 = vmatprep.subr.bf16.mxu1 %v4947_v61 }
  0xf5   :  { %v5380_v63 = vpop.f32.mrb[0].mxu0 }
  0xf6   :  { %v5382_v0 = vpop.f32.mrb[1].mxu0 }
  0xf7   :  { %v5387_v2 = vpop.f32.mrb[2].mxu0 }
  0xf8   :  { %v5392_v4 = vpop.f32.mrb[3].mxu0 }
  0xfa   :  { %4766 = vmatmul.mubr.bf16.gmra.mrb[108].mxu0 %v4926_v1 }
  0xfb   :  { %4769 = vmatprep.mubr.bf16.mxu0 %v4927_v3  ;;  %v4948_v3 = vld [vmem:[%s6643_s2 + $0x10] sm:$0xff]  }
  0xfc   :  { %4282 = vmatpush3.bf16.msra.mxu1 %v4948_v3 }
  0xfd   :  { %v5394_v5 = vpop.f32.mrb[4].mxu0 }
  0xfe   :  { %v5396_v6 = vpop.f32.mrb[5].mxu0 }
  0xff   :  { %v5401_v8 = vpop.f32.mrb[6].mxu0 }
 0x100   :  { %v5406_v10 = vpop.f32.mrb[7].mxu0 }
 0x102   :  { %4770 = vmatmul.mubr.bf16.gmra.mrb[112].mxu0 %v4928_v7 }
 0x103   :  { %4773 = vmatprep.mubr.bf16.mxu0 %v4929_v9  ;;  %v4949_v9 = vld [vmem:[%s6643_s2 + $0x58] sm:$0xff]  }
 0x104   :  { %4283 = vmatprep.subr.bf16.mxu1 %v4949_v9  ;;  %v4957_v9 = vld [vmem:[%s6643_s2 + $0x70] sm:$0xff]  }
 0x105   :  { %v5408_v11 = vpop.f32.mrb[8].mxu0 }
 0x106   :  { %v5410_v12 = vpop.f32.mrb[9].mxu0 }
 0x107   :  { %v5415_v14 = vpop.f32.mrb[10].mxu0 }
 0x108   :  { %v5420_v16 = vpop.f32.mrb[11].mxu0 }
 0x10a   :  { %4774 = vmatmul.mubr.bf16.gmra.mrb[116].mxu0 %v4930_v13  ;;  %v4950_v13 = vld [vmem:[%s6643_s2 + $0x18] sm:$0xff]  }
 0x10b   :  { %4777 = vmatprep.mubr.bf16.mxu0 %v4931_v15  ;;  %4284 = vmatpush3.bf16.msra.mxu1 %v4950_v13  ;;  %v4959_v13 = vld [vmem:[%s6643_s2 + $0x78] sm:$0xff]  }
 0x10d   :  { %v5422_v17 = vpop.f32.mrb[12].mxu0 }
 0x10e   :  { %v5424_v18 = vpop.f32.mrb[13].mxu0 }
 0x10f   :  { %v5429_v20 = vpop.f32.mrb[14].mxu0 }
 0x110   :  { %v5434_v22 = vpop.f32.mrb[15].mxu0 }
 0x112   :  { %4778 = vmatmul.mubr.bf16.gmra.mrb[120].mxu0 %v4932_v19 }
 0x113   :  { %4781 = vmatprep.mubr.bf16.mxu0 %v4933_v21 }
 0x115   :  { %v5436_v23 = vpop.f32.mrb[16].mxu0 }
 0x116   :  { %6687 = vst [vmem:[#allocation2_spill] sm:$0xff] %v5436_v23  ;;  %v5438_v24 = vpop.f32.mrb[17].mxu0 }
 0x117   :  { %6688 = vst [vmem:[#allocation3_spill] sm:$0xff] %v5438_v24  ;;  %v5443_v26 = vpop.f32.mrb[18].mxu0 }
 0x118   :  { %6689 = vst [vmem:[#allocation4_spill] sm:$0xff] %v5443_v26  ;;  %v5448_v28 = vpop.f32.mrb[19].mxu0 }
 0x119   :  { %6690 = vst [vmem:[#allocation5_spill] sm:$0xff] %v5448_v28 }
 0x11a   :  { %4782 = vmatmul.mubr.bf16.gmra.mrb[124].mxu0 %v4934_v25  ;;  %v4977_v25 = vld [vmem:[%s6643_s2 + $0x498] sm:$0xff]  }
 0x11b   :  { %4785 = vmatprep.mubr.bf16.mxu0 %v4935_v27 }
 0x11d   :  { %v5450_v29 = vpop.f32.mrb[20].mxu0 }
 0x11e   :  { %6691 = vst [vmem:[#allocation6_spill] sm:$0xff] %v5450_v29  ;;  %v5452_v30 = vpop.f32.mrb[21].mxu0 }
 0x11f   :  { %6692 = vst [vmem:[#allocation7_spill] sm:$0xff] %v5452_v30  ;;  %v5457_v32 = vpop.f32.mrb[22].mxu0 }
 0x120   :  { %6693 = vst [vmem:[#allocation8_spill] sm:$0xff] %v5457_v32  ;;  %v5462_v34 = vpop.f32.mrb[23].mxu0 }
 0x121   :  { %6694 = vst [vmem:[#allocation9_spill] sm:$0xff] %v5462_v34 }
 0x122   :  { %4786 = vmatmul.mubr.bf16.gmra.mrb[128].mxu0 %v4936_v31  ;;  %v4951_v31 = vld [vmem:[%s6643_s2 + $0x60] sm:$0xff]  }
 0x123   :  { %4789 = vmatprep.mubr.bf16.mxu0 %v4937_v33  ;;  %4285 = vmatprep.subr.bf16.mxu1 %v4951_v31 }
 0x125   :  { %v5464_v35 = vpop.f32.mrb[24].mxu0 }
 0x126   :  { %6695 = vst [vmem:[#allocation10_spill] sm:$0xff] %v5464_v35  ;;  %v5466_v36 = vpop.f32.mrb[25].mxu0 }
 0x127   :  { %6696 = vst [vmem:[#allocation11_spill] sm:$0xff] %v5466_v36  ;;  %v5471_v38 = vpop.f32.mrb[26].mxu0 }
 0x128   :  { %6697 = vst [vmem:[#allocation12_spill] sm:$0xff] %v5471_v38  ;;  %v5476_v40 = vpop.f32.mrb[27].mxu0 }
 0x129   :  { %6698 = vst [vmem:[#allocation13_spill] sm:$0xff] %v5476_v40 }
 0x12a   :  { %4790 = vmatmul.mubr.bf16.gmra.mrb[132].mxu0 %v4938_v37 }
 0x12b   :  { %4793 = vmatprep.mubr.bf16.mxu0 %v4939_v39  ;;  %v4952_v39 = vld [vmem:[%s6643_s2 + $0x20] sm:$0xff]  }
 0x12c   :  { %4286 = vmatpush3.bf16.msra.mxu1 %v4952_v39  ;;  %v4958_v39 = vld [vmem:[%s6643_s2 + $0x30] sm:$0xff]  }
 0x12d   :  { %v5478_v41 = vpop.f32.mrb[28].mxu0 }
 0x12e   :  { %6699 = vst [vmem:[#allocation14_spill] sm:$0xff] %v5478_v41  ;;  %v5480_v42 = vpop.f32.mrb[29].mxu0 }
 0x12f   :  { %6700 = vst [vmem:[#allocation15_spill] sm:$0xff] %v5480_v42  ;;  %v5485_v44 = vpop.f32.mrb[30].mxu0 }
 0x130   :  { %6701 = vst [vmem:[#allocation16_spill] sm:$0xff] %v5485_v44  ;;  %v5490_v46 = vpop.f32.mrb[31].mxu0 }
 0x131   :  { %6702 = vst [vmem:[#allocation17_spill] sm:$0xff] %v5490_v46 }
 0x132   :  { %4794 = vmatmul.mubr.bf16.gmra.mrb[136].mxu0 %v4940_v43  ;;  %v4961_v43 = vld [vmem:[%s6643_s2 + $0xc0] sm:$0xff]  }
 0x133   :  { %4797 = vmatprep.mubr.bf16.mxu0 %v4941_v45  ;;  %v4953_v45 = vld [vmem:[%s6643_s2 + $0x68] sm:$0xff]  }
 0x134   :  { %4287 = vmatprep.subr.bf16.mxu1 %v4953_v45 }
 0x135   :  { %v5492_v47 = vpop.f32.mrb[32].mxu0 }
 0x136   :  { %6703 = vst [vmem:[#allocation18_spill] sm:$0xff] %v5492_v47  ;;  %v5494_v48 = vpop.f32.mrb[33].mxu0 }
 0x137   :  { %6704 = vst [vmem:[#allocation19_spill] sm:$0xff] %v5494_v48  ;;  %v5499_v50 = vpop.f32.mrb[34].mxu0 }
 0x138   :  { %6705 = vst [vmem:[#allocation20_spill] sm:$0xff] %v5499_v50  ;;  %v5504_v52 = vpop.f32.mrb[35].mxu0 }
 0x139   :  { %6706 = vst [vmem:[#allocation21_spill] sm:$0xff] %v5504_v52 }
 0x13a   :  { %4798 = vmatmul.mubr.bf16.gmra.mrb[140].mxu0 %v4942_v49  ;;  %v4955_v49 = vld [vmem:[%s6643_s2 + $0x28] sm:$0xff]  }
 0x13b   :  { %4288 = vmatpush3.bf16.msra.mxu1 %v4955_v49  ;;  %v4956_v49 = vld [vmem:[%s6643_s2 + $0x480] sm:$0xff]  }
 0x13c   :  { %4289 = vmatprep.subr.bf16.mxu1 %v4957_v9  ;;  %4530 = vmatpush3.bf16.msra.mxu0 %v4956_v49 }
 0x13d   :  { %v5515_v56 = vpop.f32.mrb[36].mxu0 }
 0x13e   :  { %v5519_v58 = vpop.f32.mrb[37].mxu0 }
 0x13f   :  { %v5523_v60 = vpop.f32.mrb[38].mxu0  ;;  %4290 = vmatpush3.bf16.msra.mxu1 %v4958_v39 }
 0x140   :  { %v5530_v1 = vpop.f32.mrb[39].mxu0  ;;  %4291 = vmatprep.subr.bf16.mxu1 %v4959_v13  ;;  %v4967_v13 = vld [vmem:[%s6643_s2 + $0x4c8] sm:$0xff]  }
 0x141   :  { %4531 = vmatprep.subr.bf16.mxu0 %v4967_v13  ;;  %v4973_v13 = vld [vmem:[%s6643_s2 + $0x490] sm:$0xff]  }
 0x143   :  { %4292 = vmatpush3.bf16.msra.mxu1 %v4960_v55  ;;  %v4969_v55 = vld [vmem:[%s6643_s2 + $0x488] sm:$0xff]  }
 0x144   :  { %4305 = vmatprep.subr.bf16.mxu1 %v4961_v43  ;;  %4532 = vmatpush3.bf16.msra.mxu0 %v4969_v55  ;;  %v4975_v43 = vld [vmem:[%s6643_s2 + $0x4d8] sm:$0xff]   ;;  %v4979_v55 = vld [vmem:[%s6643_s2 + $0x4e0] sm:$0xff]  }
 0x145   :  { %v5543_v15 = vpop.f32.mrb[40].mxu0  ;;  %4533 = vmatprep.subr.bf16.mxu0 %v4971_v57  ;;  %v4983_v57 = vld [vmem:[%s6643_s2 + $0x4e8] sm:$0xff]  }
 0x146   :  { %v5547_v21 = vpop.f32.mrb[41].mxu0 }
 0x147   :  { %v5551_v27 = vpop.f32.mrb[42].mxu0 }
 0x148   :  { %v5558_v37 = vpop.f32.mrb[43].mxu0  ;;  %4534 = vmatpush3.bf16.msra.mxu0 %v4973_v13 }
 0x149   :  { %4535 = vmatprep.subr.bf16.mxu0 %v4975_v43  ;;  %v4981_v43 = vld [vmem:[%s6643_s2 + $0x4a0] sm:$0xff]  }
 0x14c   :  { %4536 = vmatpush3.bf16.msra.mxu0 %v4977_v25  ;;  %v4987_v25 = vld [vmem:[%s6643_s2 + $0x4f0] sm:$0xff]  }
 0x14d   :  { %v5571_v51 = vpop.f32.mrb[44].mxu0  ;;  %4537 = vmatprep.subr.bf16.mxu0 %v4979_v55  ;;  %v4991_v55 = vld [vmem:[%s6643_s2 + $0x4f8] sm:$0xff]  }
 0x14e   :  { %v5575_v54 = vpop.f32.mrb[45].mxu0 }
 0x14f   :  { %v5582_v3 = vpop.f32.mrb[46].mxu0 }
 0x150   :  { %v5589_v31 = vpop.f32.mrb[47].mxu0  ;;  %4538 = vmatpush3.bf16.msra.mxu0 %v4981_v43 }
 0x151   :  { %4539 = vmatprep.subr.bf16.mxu0 %v4983_v57  ;;  %v4989_v57 = vld [vmem:[%s6643_s2 + $0x4b0] sm:$0xff]  }
 0x155   :  { %v5605_v61 = vpop.f32.mrb[48].mxu0 }
 0x156   :  { %v5609_v39 = vpop.f32.mrb[49].mxu0 }
 0x157   :  { %v5613_v53 = vpop.f32.mrb[50].mxu0 }
 0x158   :  { %v5620_v49 = vpop.f32.mrb[51].mxu0 }
 0x15d   :  { %v5624_v9 = vpop.f32.mrb[52].mxu0 }
 0x15e   :  { %6707 = vst [vmem:[#allocation22_spill] sm:$0xff] %v5624_v9  ;;  %v5628_v45 = vpop.f32.mrb[53].mxu0 }
 0x15f   :  { %6708 = vst [vmem:[#allocation23_spill] sm:$0xff] %v5628_v45  ;;  %v5632_v19 = vpop.f32.mrb[54].mxu0 }
 0x160   :  { %6709 = vst [vmem:[#allocation24_spill] sm:$0xff] %v5632_v19  ;;  %v5636_v7 = vpop.f32.mrb[55].mxu0 }
 0x161   :  { %6710 = vst [vmem:[#allocation25_spill] sm:$0xff] %v5636_v7 }
 0x165   :  { %v5646_v62 = vpop.f32.mrb[56].mxu0 }
 0x166   :  { %6711 = vst [vmem:[#allocation26_spill] sm:$0xff] %v5646_v62  ;;  %v5650_v33 = vpop.f32.mrb[57].mxu0 }
 0x167   :  { %6712 = vst [vmem:[#allocation27_spill] sm:$0xff] %v5650_v33  ;;  %v5654_v59 = vpop.f32.mrb[58].mxu0 }
 0x168   :  { %6713 = vst [vmem:[#allocation28_spill] sm:$0xff] %v5654_v59  ;;  %v5661_v28 = vpop.f32.mrb[59].mxu0  ;;  %v4985_v59 = vld [vmem:[%s6643_s2 + $0x4a8] sm:$0xff]  }
 0x169   :  { %6714 = vst [vmem:[#allocation29_spill] sm:$0xff] %v5661_v28  ;;  %4540 = vmatpush3.bf16.msra.mxu0 %v4985_v59  ;;  %v4995_v59 = vld [vmem:[%s6643_s2 + $0x5c0] sm:$0xff]  }
 0x16a   :  { %4541 = vmatprep.subr.bf16.mxu0 %v4987_v25 }
 0x16d   :  { %v5674_v7 = vpop.f32.mrb[60].mxu0  ;;  %4542 = vmatpush3.bf16.msra.mxu0 %v4989_v57 }
 0x16e   :  { %6715 = vst [vmem:[#allocation30_spill] sm:$0xff] %v5674_v7  ;;  %v5678_v32 = vpop.f32.mrb[61].mxu0  ;;  %4543 = vmatprep.subr.bf16.mxu0 %v4991_v55 }
 0x16f   :  { %6716 = vst [vmem:[#allocation31_spill] sm:$0xff] %v5678_v32  ;;  %v5682_v13 = vpop.f32.mrb[62].mxu0 }
 0x170   :  { %6717 = vst [vmem:[#allocation32_spill] sm:$0xff] %v5682_v13  ;;  %v5689_v34 = vpop.f32.mrb[63].mxu0  ;;  %v4993_v13 = vld [vmem:[%s6643_s2 + $0x4b8] sm:$0xff]  }
 0x171   :  { %6718 = vst [vmem:[#allocation33_spill] sm:$0xff] %v5689_v34  ;;  %4544 = vmatpush3.bf16.msra.mxu0 %v4993_v13 }
 0x172   :  { %4585 = vmatprep.subr.bf16.mxu0 %v4995_v59 }
 0x175   :  { %v5702_v28 = vpop.f32.mrb[64].mxu0 }
 0x176   :  { %6719 = vst [vmem:[#allocation34_spill] sm:$0xff] %v5702_v28  ;;  %v5706_v38 = vpop.f32.mrb[65].mxu0 }
 0x177   :  { %6720 = vst [vmem:[#allocation35_spill] sm:$0xff] %v5706_v38  ;;  %v5710_v43 = vpop.f32.mrb[66].mxu0 }
 0x178   :  { %6721 = vst [vmem:[#allocation36_spill] sm:$0xff] %v5710_v43  ;;  %v5717_v40 = vpop.f32.mrb[67].mxu0 }
 0x179   :  { %6722 = vst [vmem:[#allocation37_spill] sm:$0xff] %v5717_v40 }
 0x17d   :  { %v5730_v34 = vpop.f32.mrb[68].mxu0 }
 0x17e   :  { %6723 = vst [vmem:[#allocation38_spill] sm:$0xff] %v5730_v34  ;;  %v5734_v44 = vpop.f32.mrb[69].mxu0 }
 0x17f   :  { %6724 = vst [vmem:[#allocation39_spill] sm:$0xff] %v5734_v44  ;;  %v5738_v57 = vpop.f32.mrb[70].mxu0 }
 0x180   :  { %6725 = vst [vmem:[#allocation40_spill] sm:$0xff] %v5738_v57  ;;  %v5745_v46 = vpop.f32.mrb[71].mxu0 }
 0x181   :  { %6726 = vst [vmem:[#allocation41_spill] sm:$0xff] %v5745_v46 }
 0x185   :  { %v4731_v43 = vpop.f32.mrb[72].mxu0 }
 0x186   :  { %v983_v13 = vpop.f32.mrb[73].mxu0 }
 0x187   :  { %v4732_v34 = vpop.f32.mrb[74].mxu0 }
 0x188   :  { %v986_v47 = vpop.f32.mrb[75].mxu0 }
 0x18d   :  { %v4735_v25 = vpop.f32.mrb[76].mxu0 }
 0x18e   :  { %v999_v44 = vpop.f32.mrb[77].mxu0 }
 0x18f   :  { %v5749_v48 = vpop.f32.mrb[78].mxu0 }
 0x190   :  { %v5751_v38 = vpop.f32.mrb[79].mxu0 }
 0x195   :  { %v5753_v42 = vpop.f32.mrb[80].mxu0 }
 0x196   :  { %v5755_v28 = vpop.f32.mrb[81].mxu0 }
 0x197   :  { %v5757_v40 = vpop.f32.mrb[82].mxu0 }
 0x198   :  { %v5759_v57 = vpop.f32.mrb[83].mxu0 }
 0x19d   :  { %v5761_v55 = vpop.f32.mrb[84].mxu0 }
 0x19e   :  { %v5763_v59 = vpop.f32.mrb[85].mxu0 }
 0x19f   :  { %v5765_v46 = vpop.f32.mrb[86].mxu0 }
 0x1a0   :  { %v5767_v52 = vpop.f32.mrb[87].mxu0 }
 0x1a5   :  { %v5769_v50 = vpop.f32.mrb[88].mxu0 }
 0x1a6   :  { %v5771_v41 = vpop.f32.mrb[89].mxu0 }
 0x1a7   :  { %6727 = vst [vmem:[#allocation42_spill] sm:$0xff] %v5771_v41  ;;  %v5773_v32 = vpop.f32.mrb[90].mxu0 }
 0x1a8   :  { %6728 = vst [vmem:[#allocation43_spill] sm:$0xff] %v5773_v32  ;;  %v5775_v36 = vpop.f32.mrb[91].mxu0 }
 0x1a9   :  { %6729 = vst [vmem:[#allocation44_spill] sm:$0xff] %v5775_v36 }
 0x1ad   :  { %v5777_v7 = vpop.f32.mrb[92].mxu0 }
 0x1ae   :  { %6730 = vst [vmem:[#allocation45_spill] sm:$0xff] %v5777_v7  ;;  %v5779_v35 = vpop.f32.mrb[93].mxu0 }
 0x1af   :  { %6731 = vst [vmem:[#allocation46_spill] sm:$0xff] %v5779_v35  ;;  %v5781_v33 = vpop.f32.mrb[94].mxu0 }
 0x1b0   :  { %6732 = vst [vmem:[#allocation47_spill] sm:$0xff] %v5781_v33  ;;  %v5783_v30 = vpop.f32.mrb[95].mxu0 }
 0x1b1   :  { %6733 = vst [vmem:[#allocation48_spill] sm:$0xff] %v5783_v30 }
 0x1b5   :  { %v5785_v62 = vpop.f32.mrb[96].mxu0 }
 0x1b6   :  { %6734 = vst [vmem:[#allocation49_spill] sm:$0xff] %v5785_v62  ;;  %v5787_v29 = vpop.f32.mrb[97].mxu0 }
 0x1b7   :  { %6735 = vst [vmem:[#allocation50_spill] sm:$0xff] %v5787_v29  ;;  %v5789_v19 = vpop.f32.mrb[98].mxu0 }
 0x1b8   :  { %6736 = vst [vmem:[#allocation51_spill] sm:$0xff] %v5789_v19  ;;  %v5791_v26 = vpop.f32.mrb[99].mxu0 }
 0x1b9   :  { %6737 = vst [vmem:[#allocation52_spill] sm:$0xff] %v5791_v26 }
 0x1bd   :  { %v5793_v45 = vpop.f32.mrb[100].mxu0 }
 0x1be   :  { %6738 = vst [vmem:[#allocation53_spill] sm:$0xff] %v5793_v45  ;;  %v5795_v24 = vpop.f32.mrb[101].mxu0 }
 0x1bf   :  { %6739 = vst [vmem:[#allocation54_spill] sm:$0xff] %v5795_v24  ;;  %v5797_v36 = vpop.f32.mrb[102].mxu0 }
 0x1c0   :  { %6740 = vst [vmem:[#allocation55_spill] sm:$0xff] %v5797_v36  ;;  %v5799_v7 = vpop.f32.mrb[103].mxu0  ;;  %v6746_v36 = vmax.f32 %v5380_v63, %v5515_v56 }
 0x1c1   :  { %6741 = vst [vmem:[#allocation56_spill] sm:$0xff] %v5799_v7 }
 0x1c5   :  { %v5801_v35 = vpop.f32.mrb[104].mxu0 }
 0x1c6   :  { %6742 = vst [vmem:[#allocation57_spill] sm:$0xff] %v5801_v35  ;;  %v5803_v33 = vpop.f32.mrb[105].mxu0  ;;  %v6747_v35 = vmax.f32 %v5382_v0, %v5519_v58  ;;  %v4963_v58 = vld [vmem:[%s6643_s2 + $0xc8] sm:$0xff]  }
 0x1c7   :  { %6743 = vst [vmem:[#allocation58_spill] sm:$0xff] %v5803_v33  ;;  %v5805_v30 = vpop.f32.mrb[106].mxu0 }
 0x1c8   :  { %6744 = vst [vmem:[#allocation59_spill] sm:$0xff] %v5805_v30  ;;  %v5807_v62 = vpop.f32.mrb[107].mxu0  ;;  %v6748_v30 = vmax.f32 %v5387_v2, %v5523_v60  ;;  %v4962_v2 = vld [vmem:[%s6643_s2 + $0x80] sm:$0xff]  }
 0x1c9   :  { %6745 = vst [vmem:[#allocation60_spill] sm:$0xff] %v5807_v62 }
 0x1cd   :  { %v4767_v29 = vpop.f32.mrb[108].mxu0 }
 0x1ce   :  { %v1308_v19 = vmax.f32 %v4731_v43, %v4767_v29  ;;  %v1127_v32 = vpop.f32.mrb[109].mxu0  ;;  %v6749_v29 = vmax.f32 %v5392_v4, %v5530_v1  ;;  %v6750_v4 = vmax.f32 %v5394_v5, %v5543_v15  ;;  %v4964_v5 = vld [vmem:[%s6643_s2 + $0x88] sm:$0xff]  }
 0x1cf   :  { %v1306_v26 = vmax.f32 %v983_v13, %v1127_v32  ;;  %v4768_v9 = vpop.f32.mrb[110].mxu0 }
 0x1d0   :  { %v1309_v45 = vmax.f32 %v4732_v34, %v4768_v9  ;;  %v1130_v23 = vpop.f32.mrb[111].mxu0  ;;  %v1344_v24 = vmax.f32 %v6746_v36, %v1308_v19 }
 0x1d1   :  { %v1342_v7 = vmax.f32 %v6747_v35, %v1306_v26  ;;  %v1307_v33 = vmax.f32 %v986_v47, %v1130_v23 }
 0x1d2   :  { %v1345_v62 = vmax.f32 %v6748_v30, %v1309_v45  ;;  %v1380_v43 = vmax.f32 %v1344_v24, 0.0 }
 0x1d3   :  { %v1343_v32 = vmax.f32 %v6749_v29, %v1307_v33  ;;  %v1378_v34 = vmax.f32 %v1342_v7, 0.0  ;;  %v6753_v7 = vmax.f32 %v5406_v10, %v5558_v37 }
 0x1d4   :  { %v1381_v9 = vmax.f32 %v1345_v62, 0.0  ;;  %v6752_v62 = vmax.f32 %v5401_v8, %v5551_v27 }
 0x1d5   :  { %v4771_v13 = vpop.f32.mrb[112].mxu0  ;;  %v1379_v41 = vmax.f32 %v1343_v32, 0.0  ;;  %v4966_v32 = vld [vmem:[%s6643_s2 + $0x90] sm:$0xff]  }
 0x1d6   :  { %v1312_v63 = vmax.f32 %v4735_v25, %v4771_v13  ;;  %v1143_v36 = vpop.f32.mrb[113].mxu0  ;;  %v5821_v56 = vpack.c.bf16 %v1381_v9, %v1380_v43  ;;  %v4968_v13 = vld [vmem:[%s6643_s2 + $0xd8] sm:$0xff]  }
 0x1d7   :  { %v1310_v0 = vmax.f32 %v999_v44, %v1143_v36  ;;  %v4772_v26 = vpop.f32.mrb[114].mxu0  ;;  %v1415_v23 = vpack.c.bf16 %v1380_v43, %v1379_v41  ;;  %v1414_v35 = vpack.c.bf16 %v1379_v41, %v1378_v34  ;;  %v6751_v44 = vmax.f32 %v5396_v6, %v5547_v21  ;;  %v4965_v6 = vld [vmem:[%s6643_s2 + $0xd0] sm:$0xff]  }
 0x1d8   :  { %v1348_v24 = vmax.f32 %v6750_v4, %v1312_v63  ;;  %v1313_v30 = vmax.f32 %v5749_v48, %v4772_v26  ;;  %v1146_v47 = vpop.f32.mrb[115].mxu0  ;;  %v6754_v43 = vmax.f32 %v5408_v11, %v5571_v51  ;;  %v4970_v11 = vld [vmem:[%s6643_s2 + $0x98] sm:$0xff]   ;;  %v6757_v51 = vmax.f32 %v5420_v16, %v5589_v31 }
 0x1d9   :  { %v1346_v60 = vmax.f32 %v6751_v44, %v1310_v0  ;;  %v1311_v41 = vmax.f32 %v5751_v38, %v1146_v47  ;;  %3076 = vmatprep.mubr.bf16.mxu1 %v1415_v23  ;;  %v6756_v0 = vmax.f32 %v5415_v14, %v5582_v3 }
 0x1da   :  { %v1349_v1 = vmax.f32 %v6752_v62, %v1313_v30  ;;  %3077 = vmatmul.mubr.bf16.vlgmr.msra.gmra.mrb[0].mxu1 %v1414_v35  ;;  %v1384_v38 = vmax.f32 %v1348_v24, 0.0  ;;  %v4974_v30 = vld [vmem:[%s6643_s2 + $0xa0] sm:$0xff]   ;;  %v6759_v62 = vmax.f32 %v5424_v18, %v5609_v39  ;;  %v4980_v18 = vld [vmem:[%s6643_s2 + $0xf0] sm:$0xff]  }
 0x1db   :  { %v1382_v48 = vmax.f32 %v1346_v60, 0.0  ;;  %v1347_v15 = vmax.f32 %v6753_v7, %v1311_v41  ;;  %4306 = vmatpush3.bf16.msra.mxu1 %v4962_v2  ;;  %v6761_v7 = vmax.f32 %v5434_v22, %v5620_v49  ;;  %v4982_v49 = vld [vmem:[%s6643_s2 + $0xb0] sm:$0xff]  }
 0x1dc   :  { %v1385_v19 = vmax.f32 %v1349_v1, 0.0  ;;  %4307 = vmatprep.subr.bf16.mxu1 %v4963_v58 }
 0x1dd   :  { %v1383_v8 = vmax.f32 %v1347_v15, 0.0  ;;  %v4775_v21 = vpop.f32.mrb[116].mxu0  ;;  %v1417_v27 = vpack.c.bf16 %v1382_v48, %v1381_v9 }
 0x1de   :  { %v1316_v33 = vmax.f32 %v5753_v42, %v4775_v21  ;;  %v1159_v45 = vpop.f32.mrb[117].mxu0  ;;  %v5850_v25 = vpack.c.bf16 %v1385_v19, %v1384_v38 }
 0x1df   :  { %v5852_v29 = vpack.c.bf16 %v1383_v8, %v1382_v48  ;;  %v1314_v10 = vmax.f32 %v5755_v28, %v1159_v45  ;;  %4308 = vmatpush3.bf16.msra.mxu1 %v4964_v5  ;;  %v4776_v37 = vpop.f32.mrb[118].mxu0  ;;  %v6755_v28 = vmax.f32 %v5410_v12, %v5575_v54  ;;  %v4972_v12 = vld [vmem:[%s6643_s2 + $0xe0] sm:$0xff]  }
 0x1e0   :  { %v1352_v34 = vmax.f32 %v6754_v43, %v1316_v33  ;;  %v1317_v9 = vmax.f32 %v5757_v40, %v4776_v37  ;;  %v1162_v42 = vpop.f32.mrb[119].mxu0  ;;  %4309 = vmatprep.subr.bf16.mxu1 %v4965_v6  ;;  %v6762_v8 = vld [vmem:[#allocation42_spill] sm:$0xff] }
 0x1e1   :  { %v1350_v63 = vmax.f32 %v6755_v28, %v1314_v10  ;;  %v1315_v36 = vmax.f32 %v5759_v57, %v1162_v42  ;;  %v6763_v45 = vld [vmem:[#allocation2_spill] sm:$0xff]  ;;  %v6767_v42 = vld [vmem:[#allocation3_spill] sm:$0xff] }
 0x1e2   :  { %v1353_v26 = vmax.f32 %v6756_v0, %v1317_v9  ;;  %v1388_v54 = vmax.f32 %v1352_v34, 0.0  ;;  %v6764_v10 = vld [vmem:[#allocation22_spill] sm:$0xff]  ;;  %v4984_v9 = vld [vmem:[%s6643_s2 + $0xf8] sm:$0xff]  }
 0x1e3   :  { %v1386_v40 = vmax.f32 %v1350_v63, 0.0  ;;  %v1351_v23 = vmax.f32 %v6757_v51, %v1315_v36  ;;  %4310 = vmatpush3.bf16.msra.mxu1 %v4966_v32  ;;  %v6765_v37 = vmax.f32 %v6763_v45, %v6764_v10  ;;  %v6770_v36 = vld [vmem:[#allocation44_spill] sm:$0xff] }
 0x1e4   :  { %v1389_v57 = vmax.f32 %v1353_v26, 0.0  ;;  %4311 = vmatprep.subr.bf16.mxu1 %v4968_v13  ;;  %v6768_v13 = vld [vmem:[#allocation23_spill] sm:$0xff]  ;;  %v6771_v26 = vld [vmem:[#allocation4_spill] sm:$0xff] }
 0x1e5   :  { %v1387_v35 = vmax.f32 %v1351_v23, 0.0  ;;  %v4779_v14 = vpop.f32.mrb[120].mxu0  ;;  %v5881_v3 = vpack.c.bf16 %v1386_v40, %v1385_v19  ;;  %v6769_v28 = vmax.f32 %v6767_v42, %v6768_v13  ;;  %v4986_v23 = vld [vmem:[%s6643_s2 + $0xb8] sm:$0xff]   ;;  %v6788_v45 = vld [vmem:[#allocation28_spill] sm:$0xff]  ;;  %v4994_v42 = vld [vmem:[%s6643_s2 + $0x108] sm:$0xff]  }
 0x1e6   :  { %v1320_v2 = vmax.f32 %v5761_v55, %v4779_v14  ;;  %v1175_v4 = vpop.f32.mrb[121].mxu0  ;;  %v5884_v24 = vpack.c.bf16 %v1389_v57, %v1388_v54  ;;  %v6758_v55 = vmax.f32 %v5422_v17, %v5605_v61  ;;  %v6760_v17 = vmax.f32 %v5429_v20, %v5613_v53  ;;  %v6775_v57 = vld [vmem:[#allocation25_spill] sm:$0xff] }
 0x1e7   :  { %v1318_v16 = vmax.f32 %v5763_v59, %v1175_v4  ;;  %4312 = vmatpush3.bf16.msra.mxu1 %v4970_v11  ;;  %v4780_v31 = vpop.f32.mrb[122].mxu0  ;;  %3084 = vmatprep.mubr.bf16.mxu1 %v5881_v3  ;;  %v5891_v47 = vpack.c.bf16 %v1388_v54, %v1387_v35  ;;  %v5893_v58 = vpack.c.bf16 %v1387_v35, %v1386_v40  ;;  %v4976_v59 = vld [vmem:[%s6643_s2 + $0xe8] sm:$0xff]   ;;  %v6772_v11 = vld [vmem:[#allocation24_spill] sm:$0xff]  ;;  %v6774_v54 = vld [vmem:[#allocation5_spill] sm:$0xff] }
 0x1e8   :  { %v1356_v44 = vmax.f32 %v6758_v55, %v1320_v2  ;;  %v1321_v60 = vmax.f32 %v5765_v46, %v4780_v31  ;;  %v1178_v41 = vpop.f32.mrb[123].mxu0  ;;  %3085 = vmatmul.mubr.bf16.gmra.mrb[4].mxu1 %v5850_v25  ;;  %4313 = vmatprep.subr.bf16.mxu1 %v4972_v12  ;;  %v4978_v46 = vld [vmem:[%s6643_s2 + $0xa8] sm:$0xff]   ;;  %v6773_v40 = vmax.f32 %v6771_v26, %v6772_v11  ;;  %v4988_v2 = vld [vmem:[%s6643_s2 + $0x140] sm:$0xff]   ;;  %v6793_v26 = vld [vmem:[#allocation49_spill] sm:$0xff] }
 0x1e9   :  { %v1354_v1 = vmax.f32 %v6759_v62, %v1318_v16  ;;  %v1319_v5 = vmax.f32 %v5767_v52, %v1178_v41  ;;  %3125 = vmatprep.mubr.bf16.mxu1 %v1417_v27  ;;  %v6776_v35 = vmax.f32 %v6774_v54, %v6775_v57  ;;  %v6778_v62 = vld [vmem:[#allocation46_spill] sm:$0xff] }
 0x1ea   :  { %v1357_v61 = vmax.f32 %v6760_v17, %v1321_v60  ;;  %v1392_v48 = vmax.f32 %v1356_v44, 0.0  ;;  %v6777_v44 = vld [vmem:[#allocation45_spill] sm:$0xff]  ;;  %v4990_v17 = vld [vmem:[%s6643_s2 + $0x100] sm:$0xff]  }
 0x1eb   :  { %v1355_v15 = vmax.f32 %v6761_v7, %v1319_v5  ;;  %4314 = vmatpush3.bf16.msra.mxu1 %v4974_v30  ;;  %v1390_v52 = vmax.f32 %v1354_v1, 0.0  ;;  %v6794_v54 = vld [vmem:[#allocation50_spill] sm:$0xff] }
 0x1ec   :  { %v1393_v39 = vmax.f32 %v1357_v61, 0.0  ;;  %4315 = vmatprep.subr.bf16.mxu1 %v4976_v59 }
 0x1ed   :  { %v1391_v6 = vmax.f32 %v1355_v15, 0.0  ;;  %v4783_v20 = vpop.f32.mrb[124].mxu0 }
 0x1ee   :  { %v1324_v53 = vmax.f32 %v5769_v50, %v4783_v20  ;;  %v1191_v38 = vpop.f32.mrb[125].mxu0  ;;  %v5920_v19 = vpack.c.bf16 %v1393_v39, %v1392_v48  ;;  %v6766_v50 = vld [vmem:[#allocation43_spill] sm:$0xff] }
 0x1ef   :  { %v1322_v21 = vmax.f32 %v6762_v8, %v1191_v38  ;;  %4316 = vmatpush3.bf16.msra.mxu1 %v4978_v46  ;;  %v4784_v22 = vpop.f32.mrb[126].mxu0  ;;  %v5926_v27 = vpack.c.bf16 %v1391_v6, %v1390_v52  ;;  %v5928_v33 = vpack.c.bf16 %v1392_v48, %v1391_v6  ;;  %v6779_v46 = vld [vmem:[#allocation6_spill] sm:$0xff]  ;;  %v4992_v6 = vld [vmem:[%s6643_s2 + $0x148] sm:$0xff]  }
 0x1f0   :  { %v1360_v32 = vmax.f32 %v6765_v37, %v1324_v53  ;;  %v1325_v43 = vmax.f32 %v6766_v50, %v4784_v22  ;;  %v1194_v34 = vpop.f32.mrb[127].mxu0  ;;  %4317 = vmatprep.subr.bf16.mxu1 %v4980_v18  ;;  %v6780_v48 = vld [vmem:[#allocation26_spill] sm:$0xff]  ;;  %v6782_v18 = vld [vmem:[#allocation47_spill] sm:$0xff]  ;;  %v6790_v50 = vld [vmem:[#allocation9_spill] sm:$0xff] }
 0x1f1   :  { %v1358_v63 = vmax.f32 %v6769_v28, %v1322_v21  ;;  %v1323_v0 = vmax.f32 %v6770_v36, %v1194_v34  ;;  %v6781_v7 = vmax.f32 %v6779_v46, %v6780_v48  ;;  %v6783_v20 = vld [vmem:[#allocation7_spill] sm:$0xff]  ;;  %v6786_v21 = vld [vmem:[#allocation48_spill] sm:$0xff] }
 0x1f2   :  { %v1361_v51 = vmax.f32 %v6773_v40, %v1325_v43  ;;  %v1396_v4 = vmax.f32 %v1360_v32, 0.0  ;;  %v6784_v53 = vld [vmem:[#allocation27_spill] sm:$0xff]  ;;  %v6791_v43 = vld [vmem:[#allocation29_spill] sm:$0xff] }
 0x1f3   :  { %v1394_v12 = vmax.f32 %v1358_v63, 0.0  ;;  %v1359_v14 = vmax.f32 %v6776_v35, %v1323_v0  ;;  %4318 = vmatpush3.bf16.msra.mxu1 %v4982_v49  ;;  %v6785_v38 = vmax.f32 %v6783_v20, %v6784_v53  ;;  %v6787_v49 = vld [vmem:[#allocation8_spill] sm:$0xff]  ;;  %v6792_v34 = vmax.f32 %v6790_v50, %v6791_v43  ;;  %v5001_v20 = vld [vmem:[%s6643_s2 + $0x588] sm:$0xff]   ;;  %v6806_v53 = vld [vmem:[#allocation13_spill] sm:$0xff] }
 0x1f4   :  { %v1397_v16 = vmax.f32 %v1361_v51, 0.0  ;;  %4319 = vmatprep.subr.bf16.mxu1 %v4984_v9  ;;  %v6789_v10 = vmax.f32 %v6787_v49, %v6788_v45  ;;  %v4996_v63 = vld [vmem:[%s6643_s2 + $0x150] sm:$0xff]  }
 0x1f5   :  { %v1395_v31 = vmax.f32 %v1359_v14, 0.0  ;;  %v4787_v30 = vpop.f32.mrb[128].mxu0  ;;  %v5953_v55 = vpack.c.bf16 %v1394_v12, %v1393_v39  ;;  %v4998_v14 = vld [vmem:[%s6643_s2 + $0x110] sm:$0xff]  }
 0x1f6   :  { %v1328_v60 = vmax.f32 %v6777_v44, %v4787_v30  ;;  %v1207_v41 = vpop.f32.mrb[129].mxu0  ;;  %v5956_v59 = vpack.c.bf16 %v1397_v16, %v1396_v4  ;;  %v6795_v4 = vld [vmem:[#allocation10_spill] sm:$0xff]  ;;  %v6798_v44 = vld [vmem:[#allocation51_spill] sm:$0xff]  ;;  %v5003_v49 = vld [vmem:[%s6643_s2 + $0x5d0] sm:$0xff]  }
 0x1f7   :  { %v1326_v1 = vmax.f32 %v6778_v62, %v1207_v41  ;;  %4320 = vmatpush3.bf16.msra.mxu1 %v4986_v23  ;;  %v4788_v5 = vpop.f32.mrb[130].mxu0  ;;  %v5962_v61 = vpack.c.bf16 %v1395_v31, %v1394_v12  ;;  %v4997_v23 = vld [vmem:[%s6643_s2 + $0x580] sm:$0xff]   ;;  %v4999_v62 = vld [vmem:[%s6643_s2 + $0x5c8] sm:$0xff]  }
 0x1f8   :  { %v1364_v15 = vmax.f32 %v6781_v7, %v1328_v60  ;;  %v1329_v52 = vmax.f32 %v6782_v18, %v4788_v5  ;;  %v1210_v39 = vpop.f32.mrb[131].mxu0  ;;  %4333 = vmatprep.subr.bf16.mxu1 %v4988_v2  ;;  %v6799_v5 = vld [vmem:[#allocation11_spill] sm:$0xff]  ;;  %v6802_v7 = vld [vmem:[#allocation52_spill] sm:$0xff] }
 0x1f9   :  { %v1362_v8 = vmax.f32 %v6785_v38, %v1326_v1  ;;  %v1327_v22 = vmax.f32 %v6786_v21, %v1210_v39  ;;  %v5000_v1 = vld [vmem:[%s6643_s2 + $0x158] sm:$0xff]   ;;  %v6803_v18 = vld [vmem:[#allocation12_spill] sm:$0xff] }
 0x1fa   :  { %v1365_v37 = vmax.f32 %v6789_v10, %v1329_v52  ;;  %3126 = vmatmul.mubr.bf16.vlgmr.msra.gmra.mrb[8].mxu1 %v5821_v56  ;;  %v1400_v13 = vmax.f32 %v1364_v15, 0.0  ;;  %v6804_v52 = vld [vmem:[#allocation32_spill] sm:$0xff]  ;;  %v6807_v38 = vld [vmem:[#allocation33_spill] sm:$0xff] }
 0x1fb   :  { %v1398_v32 = vmax.f32 %v1362_v8, 0.0  ;;  %v1363_v9 = vmax.f32 %v6792_v34, %v1327_v22  ;;  %3133 = vmatprep.mubr.bf16.mxu1 %v5891_v47  ;;  %4334 = vmatpush3.bf16.msra.mxu1 %v4990_v17  ;;  %v6800_v17 = vld [vmem:[#allocation31_spill] sm:$0xff]  ;;  %v6805_v39 = vmax.f32 %v6803_v18, %v6804_v52  ;;  %v6808_v8 = vmax.f32 %v6806_v53, %v6807_v38  ;;  %v5002_v22 = vld [vmem:[%s6643_s2 + $0x118] sm:$0xff]   ;;  %v5011_v53 = vld [vmem:[%s6643_s2 + $0x5e0] sm:$0xff]  }
 0x1fc   :  { %v1401_v28 = vmax.f32 %v1365_v37, 0.0  ;;  %4335 = vmatprep.subr.bf16.mxu1 %v4992_v6  ;;  %v6801_v46 = vmax.f32 %v6799_v5, %v6800_v17  ;;  %v5004_v37 = vld [vmem:[%s6643_s2 + $0x160] sm:$0xff]   ;;  %v6809_v34 = vld [vmem:[#allocation53_spill] sm:$0xff]  ;;  %v6819_v5 = vld [vmem:[#allocation16_spill] sm:$0xff] }
 0x1fd   :  { %v1399_v56 = vmax.f32 %v1363_v9, 0.0  ;;  %v4791_v36 = vpop.f32.mrb[132].mxu0  ;;  %v5989_v0 = vpack.c.bf16 %v1398_v32, %v1397_v16  ;;  %v6796_v16 = vld [vmem:[#allocation30_spill] sm:$0xff]  ;;  %v6820_v17 = vld [vmem:[#allocation36_spill] sm:$0xff]  ;;  %v6822_v18 = vld [vmem:[#allocation17_spill] sm:$0xff] }
 0x1fe   :  { %v1332_v11 = vmax.f32 %v6793_v26, %v4791_v36  ;;  %v1223_v40 = vpop.f32.mrb[133].mxu0  ;;  %v5992_v51 = vpack.c.bf16 %v1401_v28, %v1400_v13  ;;  %v6797_v31 = vmax.f32 %v6795_v4, %v6796_v16  ;;  %v6810_v28 = vld [vmem:[#allocation54_spill] sm:$0xff]  ;;  %v5007_v26 = vld [vmem:[%s6643_s2 + $0x5d8] sm:$0xff]  }
 0x1ff   :  { %v5997_v12 = vpack.c.bf16 %v1400_v13, %v1399_v56  ;;  %v1330_v57 = vmax.f32 %v6794_v54, %v1223_v40  ;;  %4336 = vmatpush3.bf16.msra.mxu1 %v4994_v42  ;;  %v4792_v35 = vpop.f32.mrb[134].mxu0  ;;  %v6003_v2 = vpack.c.bf16 %v1399_v56, %v1398_v32  ;;  %v5005_v13 = vld [vmem:[%s6643_s2 + $0x590] sm:$0xff]   ;;  %v5006_v36 = vld [vmem:[%s6643_s2 + $0x120] sm:$0xff]   ;;  %v6823_v52 = vld [vmem:[#allocation37_spill] sm:$0xff] }
 0x200   :  { %v1368_v30 = vmax.f32 %v6797_v31, %v1332_v11  ;;  %v1333_v60 = vmax.f32 %v6798_v44, %v4792_v35  ;;  %v1226_v41 = vpop.f32.mrb[135].mxu0  ;;  %3517 = vmatprep.mubr.bf16.mxu0 %v5992_v51  ;;  %4337 = vmatprep.subr.bf16.mxu1 %v4996_v63  ;;  %v6812_v54 = vld [vmem:[#allocation34_spill] sm:$0xff]  ;;  %v5008_v31 = vld [vmem:[%s6643_s2 + $0x168] sm:$0xff]  }
 0x201   :  { %v1366_v48 = vmax.f32 %v6801_v46, %v1330_v57  ;;  %v1331_v15 = vmax.f32 %v6802_v7, %v1226_v41  ;;  %3518 = vmatmul.mubr.bf16.vlgmr.msra.gmra.mrb[144].mxu0 %v5997_v12  ;;  %v6816_v44 = vld [vmem:[#allocation35_spill] sm:$0xff]  ;;  %v6821_v46 = vmax.f32 %v6819_v5, %v6820_v17  ;;  %v5009_v7 = vld [vmem:[%s6643_s2 + $0x598] sm:$0xff]  }
 0x202   :  { %v1369_v6 = vmax.f32 %v6805_v39, %v1333_v60  ;;  %3134 = vmatmul.mubr.bf16.gmra.mrb[12].mxu1 %v5893_v58  ;;  %4586 = vmatpush3.bf16.msra.mxu0 %v4997_v23  ;;  %v1404_v45 = vmax.f32 %v1368_v30, 0.0  ;;  %v6811_v23 = vld [vmem:[#allocation14_spill] sm:$0xff]  ;;  %v6815_v30 = vld [vmem:[#allocation15_spill] sm:$0xff]  ;;  %v6824_v39 = vmax.f32 %v6822_v18, %v6823_v52  ;;  %v5018_v52 = vld [vmem:[%s6643_s2 + $0x138] sm:$0xff]  }
 0x203   :  { %v1367_v21 = vmax.f32 %v6808_v8, %v1331_v15  ;;  %4338 = vmatpush3.bf16.msra.mxu1 %v4998_v14  ;;  %3174 = vmatprep.mubr.bf16.mxu1 %v5850_v25  ;;  %v1402_v32 = vmax.f32 %v1366_v48, 0.0  ;;  %v6813_v57 = vmax.f32 %v6811_v23, %v6812_v54  ;;  %v6814_v14 = vld [vmem:[#allocation55_spill] sm:$0xff]  ;;  %v6817_v60 = vmax.f32 %v6815_v30, %v6816_v44  ;;  %v6834_v30 = vld [vmem:[#allocation60_spill] sm:$0xff] }
 0x204   :  { %v1405_v10 = vmax.f32 %v1369_v6, 0.0  ;;  %4587 = vmatprep.subr.bf16.mxu0 %v4999_v62  ;;  %4339 = vmatprep.subr.bf16.mxu1 %v5000_v1  ;;  %v6818_v62 = vld [vmem:[#allocation56_spill] sm:$0xff]  ;;  %v6830_v23 = vld [vmem:[#allocation59_spill] sm:$0xff] }
 0x205   :  { %v1403_v50 = vmax.f32 %v1367_v21, 0.0  ;;  %v4795_v43 = vpop.f32.mrb[136].mxu0  ;;  %v5012_v21 = vld [vmem:[%s6643_s2 + $0x170] sm:$0xff]   ;;  %v5017_v17 = vld [vmem:[%s6643_s2 + $0x5a8] sm:$0xff]  }
 0x206   :  { %v6041_v25 = vpack.c.bf16 %v1405_v10, %v1404_v45  ;;  %v1336_v9 = vmax.f32 %v6809_v34, %v4795_v43  ;;  %4588 = vmatpush3.bf16.msra.mxu0 %v5001_v20  ;;  %v1239_v42 = vpop.f32.mrb[137].mxu0  ;;  %v5010_v20 = vld [vmem:[%s6643_s2 + $0x128] sm:$0xff]   ;;  %v5013_v43 = vld [vmem:[%s6643_s2 + $0x5a0] sm:$0xff]  }
 0x207   :  { %v1334_v63 = vmax.f32 %v6810_v28, %v1239_v42  ;;  %4340 = vmatpush3.bf16.msra.mxu1 %v5002_v22  ;;  %v4796_v56 = vpop.f32.mrb[138].mxu0  ;;  %4589 = vmatprep.subr.bf16.mxu0 %v5003_v49  ;;  %v6054_v11 = vpack.c.bf16 %v1403_v50, %v1402_v32  ;;  %v6056_v40 = vpack.c.bf16 %v1404_v45, %v1403_v50 }
 0x208   :  { %v1372_v35 = vmax.f32 %v6813_v57, %v1336_v9  ;;  %v1337_v4 = vmax.f32 %v6814_v14, %v4796_v56  ;;  %v1242_v16 = vpop.f32.mrb[139].mxu0  ;;  %4341 = vmatprep.subr.bf16.mxu1 %v5004_v37  ;;  %v6825_v37 = vld [vmem:[#allocation57_spill] sm:$0xff]  ;;  %v6826_v9 = vld [vmem:[#allocation58_spill] sm:$0xff]  ;;  %v6831_v14 = vld [vmem:[#allocation19_spill] sm:$0xff] }
 0x209   :  { %v1370_v41 = vmax.f32 %v6817_v60, %v1334_v63  ;;  %v1335_v1 = vmax.f32 %v6818_v62, %v1242_v16  ;;  %v6827_v63 = vld [vmem:[#allocation18_spill] sm:$0xff]  ;;  %v5016_v60 = vld [vmem:[%s6643_s2 + $0x178] sm:$0xff]   ;;  %v6836_v62 = vld [vmem:[#allocation40_spill] sm:$0xff] }
 0x20a   :  { %v1373_v48 = vmax.f32 %v6821_v46, %v1337_v4  ;;  %4590 = vmatpush3.bf16.msra.mxu0 %v5005_v13  ;;  %v1408_v38 = vmax.f32 %v1372_v35, 0.0  ;;  %v6828_v56 = vld [vmem:[#allocation38_spill] sm:$0xff]  ;;  %v5015_v35 = vld [vmem:[%s6643_s2 + $0x5e8] sm:$0xff]  }
 0x20b   :  { %v1406_v15 = vmax.f32 %v1370_v41, 0.0  ;;  %v1371_v6 = vmax.f32 %v6824_v39, %v1335_v1  ;;  %4342 = vmatpush3.bf16.msra.mxu1 %v5006_v36  ;;  %4591 = vmatprep.subr.bf16.mxu0 %v5007_v26  ;;  %v6829_v36 = vmax.f32 %v6827_v63, %v6828_v56  ;;  %v6832_v4 = vld [vmem:[#allocation39_spill] sm:$0xff]  ;;  %v6835_v41 = vld [vmem:[#allocation20_spill] sm:$0xff]  ;;  %v5031_v63 = vld [vmem:[%s6643_s2 + $0x1e0] sm:$0xff]  }
 0x20c   :  { %v1409_v8 = vmax.f32 %v1373_v48, 0.0  ;;  %4343 = vmatprep.subr.bf16.mxu1 %v5008_v31  ;;  %v6833_v16 = vmax.f32 %v6831_v14, %v6832_v4  ;;  %v6837_v1 = vmax.f32 %v6835_v41, %v6836_v62  ;;  %v6838_v48 = vld [vmem:[#allocation21_spill] sm:$0xff]  ;;  %v5019_v39 = vld [vmem:[%s6643_s2 + $0x5f0] sm:$0xff]   ;;  %v5032_v56 = vld [vmem:[%s6643_s2 + $0x1a0] sm:$0xff]  }
 0x20d   :  { %v1407_v22 = vmax.f32 %v1371_v6, 0.0  ;;  %v4799_v49 = vpop.f32.mrb[140].mxu0  ;;  %v1437_v45 = vpack.c.bf16 %v1406_v15, %v1405_v10  ;;  %v5014_v10 = vld [vmem:[%s6643_s2 + $0x130] sm:$0xff]   ;;  %v5040_v14 = vld [vmem:[%s6643_s2 + $0x200] sm:$0xff]   ;;  %v5041_v4 = vld [vmem:[%s6643_s2 + $0x248] sm:$0xff]  }
 0x20e   :  { %v1340_v32 = vmax.f32 %v6825_v37, %v4799_v49  ;;  %4592 = vmatpush3.bf16.msra.mxu0 %v5009_v7  ;;  %v1255_v50 = vpop.f32.mrb[141].mxu0  ;;  %v6091_v34 = vpack.c.bf16 %v1409_v8, %v1408_v38  ;;  %v6839_v7 = vld [vmem:[#allocation41_spill] sm:$0xff]  ;;  %v5021_v49 = vld [vmem:[%s6643_s2 + $0x5b0] sm:$0xff]   ;;  %v5048_v41 = vld [vmem:[%s6643_s2 + $0x220] sm:$0xff]  }
 0x20f   :  { %v1338_v42 = vmax.f32 %v6826_v9, %v1255_v50  ;;  %4344 = vmatpush3.bf16.msra.mxu1 %v5010_v20  ;;  %v4800_v13 = vpop.f32.mrb[142].mxu0  ;;  %4593 = vmatprep.subr.bf16.mxu0 %v5011_v53  ;;  %v6094_v28 = vpack.c.bf16 %v1407_v22, %v1406_v15  ;;  %v6840_v15 = vmax.f32 %v6838_v48, %v6839_v7  ;;  %v5020_v53 = vld [vmem:[%s6643_s2 + $0x1c0] sm:$0xff]   ;;  %v5024_v50 = vld [vmem:[%s6643_s2 + $0x1c8] sm:$0xff]  }
 0x210   :  { %v1376_v26 = vmax.f32 %v6829_v36, %v1340_v32  ;;  %v1341_v54 = vmax.f32 %v6830_v23, %v4800_v13  ;;  %v1258_v57 = vpop.f32.mrb[143].mxu0  ;;  %4345 = vmatprep.subr.bf16.mxu1 %v5012_v21  ;;  %v5026_v9 = vld [vmem:[%s6643_s2 + $0x188] sm:$0xff]   ;;  %v5029_v13 = vld [vmem:[%s6643_s2 + $0x1d8] sm:$0xff]   ;;  %v5036_v23 = vld [vmem:[%s6643_s2 + $0x1b0] sm:$0xff]  }
 0x211   :  { %v1374_v31 = vmax.f32 %v6833_v16, %v1338_v42  ;;  %v1339_v44 = vmax.f32 %v6834_v30, %v1258_v57  ;;  %3525 = vmatprep.mubr.bf16.mxu0 %v6094_v28  ;;  %v5027_v42 = vld [vmem:[%s6643_s2 + $0x1d0] sm:$0xff]   ;;  %v5033_v36 = vld [vmem:[%s6643_s2 + $0x1e8] sm:$0xff]   ;;  %v5038_v57 = vld [vmem:[%s6643_s2 + $0x1b8] sm:$0xff]  }
 0x212   :  { %v1377_v5 = vmax.f32 %v6837_v1, %v1341_v54  ;;  %4594 = vmatpush3.bf16.msra.mxu0 %v5013_v43  ;;  %v1412_v6 = vmax.f32 %v1376_v26, 0.0  ;;  %v5025_v43 = vld [vmem:[%s6643_s2 + $0x5b8] sm:$0xff]   ;;  %v5035_v26 = vld [vmem:[%s6643_s2 + $0x1f0] sm:$0xff]   ;;  %v5042_v16 = vld [vmem:[%s6643_s2 + $0x208] sm:$0xff]  }
 0x213   :  { %v1410_v46 = vmax.f32 %v1374_v31, 0.0  ;;  %v1375_v18 = vmax.f32 %v6840_v15, %v1339_v44  ;;  %4346 = vmatpush3.bf16.msra.mxu1 %v5014_v10  ;;  %3526 = vmatmul.mubr.bf16.gmra.mrb[148].mxu0 %v1437_v45  ;;  %v5030_v10 = vld [vmem:[%s6643_s2 + $0x198] sm:$0xff]   ;;  %v5043_v31 = vld [vmem:[%s6643_s2 + $0x250] sm:$0xff]   ;;  %v5049_v62 = vld [vmem:[%s6643_s2 + $0x268] sm:$0xff]  }
 0x214   :  { %v1413_v20 = vmax.f32 %v1377_v5, 0.0  ;;  %3615 = vmatprep.mubr.bf16.mxu0 %v1437_v45  ;;  %4595 = vmatprep.subr.bf16.mxu0 %v5015_v35  ;;  %v5022_v45 = vld [vmem:[%s6643_s2 + $0x180] sm:$0xff]   ;;  %v5037_v54 = vld [vmem:[%s6643_s2 + $0x1f8] sm:$0xff]   ;;  %v5044_v30 = vld [vmem:[%s6643_s2 + $0x210] sm:$0xff]  }
 0x215   :  { %v1411_v38 = vmax.f32 %v1375_v18, 0.0  ;;  %4347 = vmatprep.subr.bf16.mxu1 %v5016_v60  ;;  %v6132_v21 = vpack.c.bf16 %v1410_v46, %v1409_v8  ;;  %v5023_v8 = vld [vmem:[%s6643_s2 + $0x5f8] sm:$0xff]   ;;  %v5039_v35 = vld [vmem:[%s6643_s2 + $0x240] sm:$0xff]   ;;  %v5051_v1 = vld [vmem:[%s6643_s2 + $0x270] sm:$0xff]  }
 0x216   :  { %v6134_v22 = vpack.c.bf16 %v1413_v20, %v1412_v6  ;;  %4596 = vmatpush3.bf16.msra.mxu0 %v5017_v17  ;;  %v5046_v44 = vld [vmem:[%s6643_s2 + $0x218] sm:$0xff]   ;;  %v5047_v60 = vld [vmem:[%s6643_s2 + $0x260] sm:$0xff]   ;;  %v5052_v5 = vld [vmem:[%s6643_s2 + $0x230] sm:$0xff]  }
 0x217   :  { %4348 = vmatpush3.bf16.msra.mxu1 %v5018_v52  ;;  %4597 = vmatprep.subr.bf16.mxu0 %v5019_v39  ;;  %v1442_v37 = vpack.c.bf16 %v1412_v6, %v1411_v38  ;;  %v1441_v32 = vpack.c.bf16 %v1411_v38, %v1410_v46  ;;  %v5053_v17 = vld [vmem:[%s6643_s2 + $0x278] sm:$0xff]   ;;  %v5055_v48 = vld [vmem:[%s6643_s2 + $0x2c0] sm:$0xff]   ;;  %v5057_v15 = vld [vmem:[%s6643_s2 + $0x2c8] sm:$0xff]  }
 0x218   :  { %4361 = vmatprep.subr.bf16.mxu1 %v5020_v53  ;;  %v5054_v46 = vld [vmem:[%s6643_s2 + $0x238] sm:$0xff]   ;;  %v5056_v7 = vld [vmem:[%s6643_s2 + $0x280] sm:$0xff]   ;;  %v5058_v18 = vld [vmem:[%s6643_s2 + $0x288] sm:$0xff]  }
 0x219   :  { %v5059_v52 = vld [vmem:[%s6643_s2 + $0x2d0] sm:$0xff]   ;;  %v5062_v6 = vld [vmem:[%s6643_s2 + $0x298] sm:$0xff]   ;;  %v5063_v20 = vld [vmem:[%s6643_s2 + $0x2e0] sm:$0xff]  }
 0x21a   :  { %3175 = vmatmul.mubr.bf16.vlgmr.msra.gmra.mrb[16].mxu1 %v5852_v29  ;;  %4598 = vmatpush3.bf16.msra.mxu0 %v5021_v49  ;;  %v5028_v29 = vld [vmem:[%s6643_s2 + $0x190] sm:$0xff]   ;;  %v5064_v53 = vld [vmem:[%s6643_s2 + $0x2a0] sm:$0xff]   ;;  %v5065_v38 = vld [vmem:[%s6643_s2 + $0x2e8] sm:$0xff]  }
 0x21b   :  { %3182 = vmatprep.mubr.bf16.mxu1 %v5926_v27  ;;  %4362 = vmatpush3.bf16.msra.mxu1 %v5022_v45  ;;  %v5060_v39 = vld [vmem:[%s6643_s2 + $0x290] sm:$0xff]  }
 0x21c   :  { %4599 = vmatprep.subr.bf16.mxu0 %v5023_v8  ;;  %4363 = vmatprep.subr.bf16.mxu1 %v5024_v50  ;;  %v5067_v49 = vld [vmem:[%s6643_s2 + $0x2f0] sm:$0xff]   ;;  %v5071_v8 = vld [vmem:[%s6643_s2 + $0x340] sm:$0xff]  }
 0x21d   :  { %v5068_v45 = vld [vmem:[%s6643_s2 + $0x2b0] sm:$0xff]   ;;  %v5072_v50 = vld [vmem:[%s6643_s2 + $0x300] sm:$0xff]  }
 0x21e   :  { %4600 = vmatpush3.bf16.msra.mxu0 %v5025_v43  ;;  %v5073_v43 = vld [vmem:[%s6643_s2 + $0x348] sm:$0xff]  }
 0x21f   :  { %4364 = vmatpush3.bf16.msra.mxu1 %v5026_v9  ;;  %v5074_v9 = vld [vmem:[%s6643_s2 + $0x308] sm:$0xff]  }
 0x220   :  { %4365 = vmatprep.subr.bf16.mxu1 %v5027_v42  ;;  %v5075_v42 = vld [vmem:[%s6643_s2 + $0x350] sm:$0xff]  }
 0x221   :  { %3616 = vmatmul.mubr.bf16.vlgmr.msra.gmra.mrb[152].mxu0 %v6041_v25 }
 0x222   :  { %3183 = vmatmul.mubr.bf16.gmra.mrb[20].mxu1 %v5884_v24  ;;  %3623 = vmatprep.mubr.bf16.mxu0 %v1442_v37  ;;  %v5069_v37 = vld [vmem:[%s6643_s2 + $0x2f8] sm:$0xff]  }
 0x223   :  { %4366 = vmatpush3.bf16.msra.mxu1 %v5028_v29  ;;  %3223 = vmatprep.mubr.bf16.mxu1 %v5893_v58  ;;  %v5034_v58 = vld [vmem:[%s6643_s2 + $0x1a8] sm:$0xff]   ;;  %v5076_v29 = vld [vmem:[%s6643_s2 + $0x310] sm:$0xff]  }
 0x224   :  { %4367 = vmatprep.subr.bf16.mxu1 %v5029_v13  ;;  %v5078_v13 = vld [vmem:[%s6643_s2 + $0x318] sm:$0xff]  }
 0x227   :  { %4368 = vmatpush3.bf16.msra.mxu1 %v5030_v10  ;;  %v5079_v10 = vld [vmem:[%s6643_s2 + $0x360] sm:$0xff]  }
 0x228   :  { %4369 = vmatprep.subr.bf16.mxu1 %v5031_v63  ;;  %v5080_v63 = vld [vmem:[%s6643_s2 + $0x320] sm:$0xff]  }
 0x229   :  { %3624 = vmatmul.mubr.bf16.gmra.mrb[156].mxu0 %v1441_v32  ;;  %v5070_v32 = vld [vmem:[%s6643_s2 + $0x2b8] sm:$0xff]  }
 0x22b   :  { %4370 = vmatpush3.bf16.msra.mxu1 %v5032_v56  ;;  %v5081_v56 = vld [vmem:[%s6643_s2 + $0x368] sm:$0xff]  }
 0x22c   :  { %4371 = vmatprep.subr.bf16.mxu1 %v5033_v36  ;;  %v5083_v36 = vld [vmem:[%s6643_s2 + $0x370] sm:$0xff]  }
 0x22f   :  { %4372 = vmatpush3.bf16.msra.mxu1 %v5034_v58  ;;  %v5084_v58 = vld [vmem:[%s6643_s2 + $0x330] sm:$0xff]  }
 0x230   :  { %4373 = vmatprep.subr.bf16.mxu1 %v5035_v26  ;;  %v5085_v26 = vld [vmem:[%s6643_s2 + $0x378] sm:$0xff]  }
 0x233   :  { %4374 = vmatpush3.bf16.msra.mxu1 %v5036_v23  ;;  %v5086_v23 = vld [vmem:[%s6643_s2 + $0x338] sm:$0xff]  }
 0x234   :  { %4375 = vmatprep.subr.bf16.mxu1 %v5037_v54  ;;  %v5087_v54 = vld [vmem:[%s6643_s2 + $0x3c0] sm:$0xff]  }
 0x237   :  { %4376 = vmatpush3.bf16.msra.mxu1 %v5038_v57  ;;  %v5088_v57 = vld [vmem:[%s6643_s2 + $0x380] sm:$0xff]  }
 0x238   :  { %4389 = vmatprep.subr.bf16.mxu1 %v5039_v35  ;;  %v5089_v35 = vld [vmem:[%s6643_s2 + $0x3c8] sm:$0xff]  }
 0x23a   :  { %3224 = vmatmul.mubr.bf16.vlgmr.msra.gmra.mrb[24].mxu1 %v5881_v3  ;;  %v5045_v3 = vld [vmem:[%s6643_s2 + $0x258] sm:$0xff]  }
 0x23b   :  { %3231 = vmatprep.mubr.bf16.mxu1 %v5920_v19  ;;  %4390 = vmatpush3.bf16.msra.mxu1 %v5040_v14  ;;  %v5090_v14 = vld [vmem:[%s6643_s2 + $0x388] sm:$0xff]  }
 0x23c   :  { %4391 = vmatprep.subr.bf16.mxu1 %v5041_v4  ;;  %v5091_v4 = vld [vmem:[%s6643_s2 + $0x3d0] sm:$0xff]  }
 0x23f   :  { %4392 = vmatpush3.bf16.msra.mxu1 %v5042_v16  ;;  %v5092_v16 = vld [vmem:[%s6643_s2 + $0x390] sm:$0xff]  }
 0x240   :  { %4393 = vmatprep.subr.bf16.mxu1 %v5043_v31  ;;  %v5095_v31 = vld [vmem:[%s6643_s2 + $0x3e0] sm:$0xff]  }
 0x242   :  { %3232 = vmatmul.mubr.bf16.gmra.mrb[28].mxu1 %v5928_v33 }
 0x243   :  { %4394 = vmatpush3.bf16.msra.mxu1 %v5044_v30  ;;  %3272 = vmatprep.mubr.bf16.mxu1 %v5884_v24  ;;  %v5050_v24 = vld [vmem:[%s6643_s2 + $0x228] sm:$0xff]   ;;  %v5096_v30 = vld [vmem:[%s6643_s2 + $0x3a0] sm:$0xff]  }
 0x244   :  { %4395 = vmatprep.subr.bf16.mxu1 %v5045_v3  ;;  %v5097_v3 = vld [vmem:[%s6643_s2 + $0x3e8] sm:$0xff]  }
 0x247   :  { %4396 = vmatpush3.bf16.msra.mxu1 %v5046_v44  ;;  %v5099_v44 = vld [vmem:[%s6643_s2 + $0x3f0] sm:$0xff]  }
 0x248   :  { %4397 = vmatprep.subr.bf16.mxu1 %v5047_v60 }
 0x24b   :  { %4398 = vmatpush3.bf16.msra.mxu1 %v5048_v41 }
 0x24c   :  { %4399 = vmatprep.subr.bf16.mxu1 %v5049_v62 }
 0x24f   :  { %4400 = vmatpush3.bf16.msra.mxu1 %v5050_v24 }
 0x250   :  { %4401 = vmatprep.subr.bf16.mxu1 %v5051_v1  ;;  %v5100_v1 = vld [vmem:[%s6643_s2 + $0x3b0] sm:$0xff]  }
 0x253   :  { %4402 = vmatpush3.bf16.msra.mxu1 %v5052_v5 }
 0x254   :  { %4403 = vmatprep.subr.bf16.mxu1 %v5053_v17  ;;  %v5101_v17 = vld [vmem:[%s6643_s2 + $0x3f8] sm:$0xff]  }
 0x257   :  { %4404 = vmatpush3.bf16.msra.mxu1 %v5054_v46 }
 0x258   :  { %4417 = vmatprep.subr.bf16.mxu1 %v5055_v48  ;;  %v5102_v48 = vld [vmem:[%s6643_s2 + $0x3b8] sm:$0xff]  }
 0x25a   :  { %3273 = vmatmul.mubr.bf16.vlgmr.msra.gmra.mrb[32].mxu1 %v5891_v47  ;;  %v5061_v47 = vld [vmem:[%s6643_s2 + $0x2d8] sm:$0xff]  }
 0x25b   :  { %3280 = vmatprep.mubr.bf16.mxu1 %v5962_v61  ;;  %4418 = vmatpush3.bf16.msra.mxu1 %v5056_v7  ;;  %v5103_v7 = vld [vmem:[%s6643_s2 + $0x440] sm:$0xff]  }
 0x25c   :  { %4419 = vmatprep.subr.bf16.mxu1 %v5057_v15  ;;  %v5104_v15 = vld [vmem:[%s6643_s2 + $0x400] sm:$0xff]  }
 0x25f   :  { %4420 = vmatpush3.bf16.msra.mxu1 %v5058_v18  ;;  %v5105_v18 = vld [vmem:[%s6643_s2 + $0x448] sm:$0xff]  }
 0x260   :  { %4421 = vmatprep.subr.bf16.mxu1 %v5059_v52 }
 0x262   :  { %3281 = vmatmul.mubr.bf16.gmra.mrb[36].mxu1 %v5953_v55 }
 0x263   :  { %4422 = vmatpush3.bf16.msra.mxu1 %v5060_v39  ;;  %3321 = vmatprep.mubr.bf16.mxu1 %v5928_v33  ;;  %v5066_v33 = vld [vmem:[%s6643_s2 + $0x2a8] sm:$0xff]  }
 0x264   :  { %4423 = vmatprep.subr.bf16.mxu1 %v5061_v47  ;;  %v5106_v39 = vld [vmem:[%s6643_s2 + $0x408] sm:$0xff]  }
 0x267   :  { %4424 = vmatpush3.bf16.msra.mxu1 %v5062_v6  ;;  %v5107_v6 = vld [vmem:[%s6643_s2 + $0x450] sm:$0xff]  }
 0x268   :  { %4425 = vmatprep.subr.bf16.mxu1 %v5063_v20 }
 0x26b   :  { %4426 = vmatpush3.bf16.msra.mxu1 %v5064_v53 }
 0x26c   :  { %4427 = vmatprep.subr.bf16.mxu1 %v5065_v38 }
 0x26f   :  { %4428 = vmatpush3.bf16.msra.mxu1 %v5066_v33 }
 0x270   :  { %4429 = vmatprep.subr.bf16.mxu1 %v5067_v49  ;;  %v5109_v49 = vld [vmem:[%s6643_s2 + $0x458] sm:$0xff]  }
 0x273   :  { %4430 = vmatpush3.bf16.msra.mxu1 %v5068_v45  ;;  %v5110_v45 = vld [vmem:[%s6643_s2 + $0x418] sm:$0xff]  }
 0x274   :  { %4431 = vmatprep.subr.bf16.mxu1 %v5069_v37  ;;  %v5111_v37 = vld [vmem:[%s6643_s2 + $0x460] sm:$0xff]  }
 0x277   :  { %4432 = vmatpush3.bf16.msra.mxu1 %v5070_v32  ;;  %v5112_v32 = vld [vmem:[%s6643_s2 + $0x420] sm:$0xff]  }
 0x278   :  { %4445 = vmatprep.subr.bf16.mxu1 %v5071_v8  ;;  %v5115_v8 = vld [vmem:[%s6643_s2 + $0x470] sm:$0xff]  }
 0x27a   :  { %3322 = vmatmul.mubr.bf16.vlgmr.msra.gmra.mrb[40].mxu1 %v5926_v27  ;;  %v5077_v27 = vld [vmem:[%s6643_s2 + $0x358] sm:$0xff]  }
 0x27b   :  { %3329 = vmatprep.mubr.bf16.mxu1 %v5989_v0  ;;  %4446 = vmatpush3.bf16.msra.mxu1 %v5072_v50 }
 0x27c   :  { %4447 = vmatprep.subr.bf16.mxu1 %v5073_v43 }
 0x27f   :  { %4448 = vmatpush3.bf16.msra.mxu1 %v5074_v9 }
 0x280   :  { %4449 = vmatprep.subr.bf16.mxu1 %v5075_v42 }
 0x282   :  { %3330 = vmatmul.mubr.bf16.gmra.mrb[44].mxu1 %v5956_v59 }
 0x283   :  { %4450 = vmatpush3.bf16.msra.mxu1 %v5076_v29  ;;  %3370 = vmatprep.mubr.bf16.mxu1 %v5953_v55  ;;  %v5082_v55 = vld [vmem:[%s6643_s2 + $0x328] sm:$0xff]   ;;  %v5116_v29 = vld [vmem:[%s6643_s2 + $0x430] sm:$0xff]  }
 0x284   :  { %4451 = vmatprep.subr.bf16.mxu1 %v5077_v27 }
 0x287   :  { %4452 = vmatpush3.bf16.msra.mxu1 %v5078_v13  ;;  %v5117_v13 = vld [vmem:[%s6643_s2 + $0x478] sm:$0xff]  }
 0x288   :  { %4453 = vmatprep.subr.bf16.mxu1 %v5079_v10 }
 0x28b   :  { %4454 = vmatpush3.bf16.msra.mxu1 %v5080_v63 }
 0x28c   :  { %4455 = vmatprep.subr.bf16.mxu1 %v5081_v56 }
 0x28f   :  { %4456 = vmatpush3.bf16.msra.mxu1 %v5082_v55  ;;  %v5118_v55 = vld [vmem:[%s6643_s2 + $0x438] sm:$0xff]  }
 0x290   :  { %4457 = vmatprep.subr.bf16.mxu1 %v5083_v36 }
 0x293   :  { %4458 = vmatpush3.bf16.msra.mxu1 %v5084_v58  ;;  %v5119_v58 = vld [vmem:[%s6643_s2 + $0x540] sm:$0xff]  }
 0x294   :  { %4459 = vmatprep.subr.bf16.mxu1 %v5085_v26 }
 0x297   :  { %4460 = vmatpush3.bf16.msra.mxu1 %v5086_v23 }
 0x298   :  { %4473 = vmatprep.subr.bf16.mxu1 %v5087_v54 }
 0x29a   :  { %3371 = vmatmul.mubr.bf16.vlgmr.msra.gmra.mrb[48].mxu1 %v5920_v19  ;;  %v5093_v19 = vld [vmem:[%s6643_s2 + $0x3d8] sm:$0xff]  }
 0x29b   :  { %3378 = vmatprep.mubr.bf16.mxu1 %v5997_v12  ;;  %4474 = vmatpush3.bf16.msra.mxu1 %v5088_v57  ;;  %v5094_v12 = vld [vmem:[%s6643_s2 + $0x398] sm:$0xff]  }
 0x29c   :  { %4475 = vmatprep.subr.bf16.mxu1 %v5089_v35 }
 0x29f   :  { %4476 = vmatpush3.bf16.msra.mxu1 %v5090_v14 }
 0x2a0   :  { %4477 = vmatprep.subr.bf16.mxu1 %v5091_v4 }
 0x2a2   :  { %3379 = vmatmul.mubr.bf16.gmra.mrb[52].mxu1 %v6003_v2 }
 0x2a3   :  { %4478 = vmatpush3.bf16.msra.mxu1 %v5092_v16  ;;  %3419 = vmatprep.mubr.bf16.mxu1 %v5956_v59  ;;  %v5098_v59 = vld [vmem:[%s6643_s2 + $0x3a8] sm:$0xff]  }
 0x2a4   :  { %4479 = vmatprep.subr.bf16.mxu1 %v5093_v19  ;;  %v5120_v19 = vld [vmem:[%s6643_s2 + $0x500] sm:$0xff]  }
 0x2a7   :  { %4480 = vmatpush3.bf16.msra.mxu1 %v5094_v12 }
 0x2a8   :  { %4481 = vmatprep.subr.bf16.mxu1 %v5095_v31 }
 0x2ab   :  { %4482 = vmatpush3.bf16.msra.mxu1 %v5096_v30  ;;  %v5121_v30 = vld [vmem:[%s6643_s2 + $0x548] sm:$0xff]  }
 0x2ac   :  { %4483 = vmatprep.subr.bf16.mxu1 %v5097_v3 }
 0x2ad   :  { %v4293_v60 = vpop.f32.mrb[0].mxu1 }
 0x2ae   :  { %v4294_v41 = vpop.f32.mrb[1].mxu1 }
 0x2af   :  { %v4295_v62 = vadd.f32 %v4294_v41, %v4293_v60  ;;  %4484 = vmatpush3.bf16.msra.mxu1 %v5098_v59  ;;  %v4296_v24 = vpop.f32.mrb[2].mxu1  ;;  %v5122_v60 = vld [vmem:[%s6643_s2 + $0x508] sm:$0xff]   ;;  %v5123_v41 = vld [vmem:[%s6643_s2 + $0x550] sm:$0xff]  }
 0x2b0   :  { %v4297_v5 = vpop.f32.mrb[3].mxu1  ;;  %4485 = vmatprep.subr.bf16.mxu1 %v5099_v44 }
 0x2b1   :  { %v4298_v46 = vadd.f32 %v4297_v5, %v4296_v24  ;;  %v5127_v24 = vld [vmem:[%s6643_s2 + $0x560] sm:$0xff]  }
 0x2b3   :  { %4486 = vmatpush3.bf16.msra.mxu1 %v5100_v1 }
 0x2b4   :  { %4487 = vmatprep.subr.bf16.mxu1 %v5101_v17  ;;  %v5128_v17 = vld [vmem:[%s6643_s2 + $0x520] sm:$0xff]  }
 0x2b7   :  { %4488 = vmatpush3.bf16.msra.mxu1 %v5102_v48 }
 0x2b8   :  { %4501 = vmatprep.subr.bf16.mxu1 %v5103_v7 }
 0x2ba   :  { %3420 = vmatmul.mubr.bf16.vlgmr.msra.gmra.mrb[56].mxu1 %v5962_v61  ;;  %v5108_v61 = vld [vmem:[%s6643_s2 + $0x410] sm:$0xff]  }
 0x2bb   :  { %3427 = vmatprep.mubr.bf16.mxu1 %v6054_v11  ;;  %4502 = vmatpush3.bf16.msra.mxu1 %v5104_v15  ;;  %v4299_v52 = vpop.f32.mrb[4].mxu1 }
 0x2bc   :  { %v4300_v47 = vpop.f32.mrb[5].mxu1  ;;  %4503 = vmatprep.subr.bf16.mxu1 %v5105_v18  ;;  %v5130_v18 = vld [vmem:[%s6643_s2 + $0x528] sm:$0xff]  }
 0x2bd   :  { %v4301_v20 = vadd.f32 %v4300_v47, %v4299_v52  ;;  %v4302_v53 = vpop.f32.mrb[6].mxu1  ;;  %v5131_v52 = vld [vmem:[%s6643_s2 + $0x570] sm:$0xff]  }
 0x2be   :  { %v4303_v38 = vpop.f32.mrb[7].mxu1 }
 0x2bf   :  { %v4304_v33 = vadd.f32 %v4303_v38, %v4302_v53  ;;  %4504 = vmatpush3.bf16.msra.mxu1 %v5106_v39  ;;  %v5132_v53 = vld [vmem:[%s6643_s2 + $0x530] sm:$0xff]  }
 0x2c0   :  { %4505 = vmatprep.subr.bf16.mxu1 %v5107_v6 }
 0x2c2   :  { %3428 = vmatmul.mubr.bf16.gmra.mrb[60].mxu1 %v5992_v51  ;;  %v5113_v51 = vld [vmem:[%s6643_s2 + $0x468] sm:$0xff]  }
 0x2c3   :  { %4506 = vmatpush3.bf16.msra.mxu1 %v5108_v61  ;;  %3468 = vmatprep.mubr.bf16.mxu1 %v6003_v2  ;;  %v5114_v2 = vld [vmem:[%s6643_s2 + $0x428] sm:$0xff]  }
 0x2c4   :  { %4507 = vmatprep.subr.bf16.mxu1 %v5109_v49 }
 0x2c7   :  { %4508 = vmatpush3.bf16.msra.mxu1 %v5110_v45 }
 0x2c8   :  { %4509 = vmatprep.subr.bf16.mxu1 %v5111_v37  ;;  %v5134_v37 = vld [vmem:[%s6643_s2 + $0x538] sm:$0xff]  }
 0x2cb   :  { %4510 = vmatpush3.bf16.msra.mxu1 %v5112_v32 }
 0x2cc   :  { %4511 = vmatprep.subr.bf16.mxu1 %v5113_v51  ;;  %v5135_v51 = vld [vmem:[%s6643_s2 + $0x600] sm:$0xff]  }
 0x2cd   :  { %v4321_v50 = vpop.f32.mrb[8].mxu1 }
 0x2ce   :  { %v4322_v43 = vpop.f32.mrb[9].mxu1 }
 0x2cf   :  { %v4323_v9 = vadd.f32 %v4322_v43, %v4321_v50  ;;  %v4324_v42 = vpop.f32.mrb[10].mxu1  ;;  %4512 = vmatpush3.bf16.msra.mxu1 %v5114_v2 }
 0x2d0   :  { %v4325_v27 = vpop.f32.mrb[11].mxu1  ;;  %4513 = vmatprep.subr.bf16.mxu1 %v5115_v8 }
 0x2d1   :  { %v6452_v10 = vadd.f32 %v4323_v9, %v4295_v62  ;;  %v4326_v63 = vadd.f32 %v4325_v27, %v4324_v42  ;;  %v5124_v62 = vld [vmem:[%s6643_s2 + $0x510] sm:$0xff]  }
 0x2d3   :  { %v6454_v56 = vadd.f32 %v4326_v63, %v4298_v46  ;;  %4514 = vmatpush3.bf16.msra.mxu1 %v5116_v29  ;;  %v5136_v63 = vld [vmem:[%s6643_s2 + $0x608] sm:$0xff]  }
 0x2d4   :  { %v4545_v36 = vpop.f32.mrb[144].mxu0  ;;  %4515 = vmatprep.subr.bf16.mxu1 %v5117_v13 }
 0x2d5   :  { %v4327_v26 = vpop.f32.mrb[12].mxu1  ;;  %v4546_v23 = vpop.f32.mrb[145].mxu0 }
 0x2d6   :  { %v4328_v54 = vpop.f32.mrb[13].mxu1  ;;  %v6462_v57 = vadd.f32 %v4546_v23, %v4545_v36  ;;  %v4548_v35 = vpop.f32.mrb[146].mxu0 }
 0x2d7   :  { %v4329_v14 = vadd.f32 %v4328_v54, %v4327_v26  ;;  %v4330_v4 = vpop.f32.mrb[14].mxu1  ;;  %4516 = vmatpush3.bf16.msra.mxu1 %v5118_v55  ;;  %v4549_v16 = vpop.f32.mrb[147].mxu0  ;;  %v5137_v26 = vld [vmem:[%s6643_s2 + $0x610] sm:$0xff]  }
 0x2d8   :  { %v4331_v12 = vpop.f32.mrb[15].mxu1  ;;  %v6467_v31 = vadd.f32 %v4549_v16, %v4548_v35  ;;  %4557 = vmatprep.subr.bf16.mxu1 %v5119_v58  ;;  %v5140_v16 = vld [vmem:[%s6643_s2 + $0x628] sm:$0xff]  }
 0x2d9   :  { %v6472_v3 = vadd.f32 %v4329_v14, %v4301_v20  ;;  %v4332_v59 = vadd.f32 %v4331_v12, %v4330_v4 }
 0x2da   :  { %3469 = vmatmul.mubr.bf16.vlgmr.msra.gmra.mrb[64].mxu1 %v5989_v0  ;;  %v5125_v0 = vld [vmem:[%s6643_s2 + $0x558] sm:$0xff]  }
 0x2db   :  { %v6475_v44 = vadd.f32 %v4332_v59, %v4304_v33  ;;  %3476 = vmatprep.mubr.bf16.mxu1 %v6041_v25  ;;  %4558 = vmatpush3.bf16.msra.mxu1 %v5120_v19  ;;  %v5126_v25 = vld [vmem:[%s6643_s2 + $0x518] sm:$0xff]  }
 0x2dc   :  { %4559 = vmatprep.subr.bf16.mxu1 %v5121_v30  ;;  %v5133_v33 = vld [vmem:[%s6643_s2 + $0x578] sm:$0xff]  }
 0x2dd   :  { %v5142_v59 = vld [vmem:[%s6643_s2 + $0x638] sm:$0xff]  }
 0x2df   :  { %4560 = vmatpush3.bf16.msra.mxu1 %v5122_v60 }
 0x2e0   :  { %4561 = vmatprep.subr.bf16.mxu1 %v5123_v41 }
 0x2e2   :  { %3477 = vmatmul.mubr.bf16.gmra.mrb[68].mxu1 %v6056_v40 }
 0x2e3   :  { %4562 = vmatpush3.bf16.msra.mxu1 %v5124_v62  ;;  %3566 = vmatprep.mubr.bf16.mxu1 %v6056_v40  ;;  %v5129_v40 = vld [vmem:[%s6643_s2 + $0x568] sm:$0xff]  }
 0x2e4   :  { %4563 = vmatprep.subr.bf16.mxu1 %v5125_v0 }
 0x2e6   :  { %v4551_v1 = vpop.f32.mrb[148].mxu0 }
 0x2e7   :  { %v4552_v5 = vpop.f32.mrb[149].mxu0  ;;  %4564 = vmatpush3.bf16.msra.mxu1 %v5126_v25 }
 0x2e8   :  { %v6501_v46 = vadd.f32 %v4552_v5, %v4551_v1  ;;  %v4554_v48 = vpop.f32.mrb[150].mxu0  ;;  %4565 = vmatprep.subr.bf16.mxu1 %v5127_v24 }
 0x2e9   :  { %v4555_v7 = vpop.f32.mrb[151].mxu0 }
 0x2ea   :  { %v6506_v15 = vadd.f32 %v4555_v7, %v4554_v48 }
 0x2eb   :  { %4566 = vmatpush3.bf16.msra.mxu1 %v5128_v17 }
 0x2ec   :  { %4567 = vmatprep.subr.bf16.mxu1 %v5129_v40 }
 0x2ed   :  { %v4349_v39 = vpop.f32.mrb[16].mxu1 }
 0x2ee   :  { %v4350_v47 = vpop.f32.mrb[17].mxu1 }
 0x2ef   :  { %v4351_v6 = vadd.f32 %v4350_v47, %v4349_v39  ;;  %v4352_v20 = vpop.f32.mrb[18].mxu1  ;;  %4568 = vmatpush3.bf16.msra.mxu1 %v5130_v18 }
 0x2f0   :  { %v4353_v38 = vpop.f32.mrb[19].mxu1  ;;  %4569 = vmatprep.subr.bf16.mxu1 %v5131_v52 }
 0x2f1   :  { %v3177_v61 = vadd.f32 %v4351_v6, %v6452_v10  ;;  %v4354_v49 = vadd.f32 %v4353_v38, %v4352_v20 }
 0x2f3   :  { %v3180_v45 = vadd.f32 %v4354_v49, %v6454_v56  ;;  %4570 = vmatpush3.bf16.msra.mxu1 %v5132_v53 }
 0x2f4   :  { %v4601_v32 = vpop.f32.mrb[152].mxu0  ;;  %4571 = vmatprep.subr.bf16.mxu1 %v5133_v33 }
 0x2f5   :  { %v4355_v2 = vpop.f32.mrb[20].mxu1  ;;  %v4602_v8 = vpop.f32.mrb[153].mxu0 }
 0x2f6   :  { %v6528_v50 = vadd.f32 %v4602_v8, %v4601_v32  ;;  %v4356_v43 = vpop.f32.mrb[21].mxu1  ;;  %v4604_v9 = vpop.f32.mrb[154].mxu0 }
 0x2f7   :  { %v4357_v42 = vadd.f32 %v4356_v43, %v4355_v2  ;;  %v4358_v29 = vpop.f32.mrb[22].mxu1  ;;  %4572 = vmatpush3.bf16.msra.mxu1 %v5134_v37  ;;  %v4605_v27 = vpop.f32.mrb[155].mxu0 }
 0x2f8   :  { %v6530_v13 = vadd.f32 %v4605_v27, %v4604_v9  ;;  %v4359_v10 = vpop.f32.mrb[23].mxu1  ;;  %4801 = vmatprep.subr.bf16.mxu1 %v5135_v51 }
 0x2f9   :  { %v3185_v56 = vadd.f32 %v4357_v42, %v6472_v3  ;;  %v4360_v55 = vadd.f32 %v4359_v10, %v4358_v29 }
 0x2fa   :  { %3567 = vmatmul.mubr.bf16.vlgmr.msra.gmra.mrb[72].mxu1 %v6054_v11  ;;  %v5138_v11 = vld [vmem:[%s6643_s2 + $0x618] sm:$0xff]  }
 0x2fb   :  { %v3188_v36 = vadd.f32 %v4360_v55, %v6475_v44  ;;  %3574 = vmatprep.mubr.bf16.mxu1 %v6132_v21  ;;  %4802 = vmatpush3.bf16.msra.mxu1 %v5135_v51  ;;  %v5139_v21 = vld [vmem:[%s6643_s2 + $0x620] sm:$0xff]  }
 0x2fc   :  { %v4607_v58 = vpop.f32.mrb[156].mxu0  ;;  %4803 = vmatprep.subr.bf16.mxu1 %v5136_v63 }
 0x2fd   :  { %v4608_v23 = vpop.f32.mrb[157].mxu0 }
 0x2fe   :  { %v6542_v54 = vadd.f32 %v4608_v23, %v4607_v58  ;;  %v4610_v35 = vpop.f32.mrb[158].mxu0 }
 0x2ff   :  { %v4611_v14 = vpop.f32.mrb[159].mxu0  ;;  %4804 = vmatpush3.bf16.msra.mxu1 %v5136_v63 }
 0x300   :  { %v6544_v4 = vadd.f32 %v4611_v14, %v4610_v35  ;;  %4805 = vmatprep.subr.bf16.mxu1 %v5137_v26  ;;  %v5159_v35 = vmov 0.0   ;;  %v5144_v14 = vld [vmem:[%s6644_s3 + $0x8] sm:$0xff]  }
 0x301   :  { %4821 = vmatprep.subr.bf16.mxu0 %v5159_v35  ;;  %4837 = vmatprep.mubr.msk.bf16.mxu0 %vm5160_vm0, %v5159_v35 }
 0x302   :  { %3575 = vmatmul.mubr.bf16.gmra.mrb[76].mxu1 %v6091_v34  ;;  %v5141_v34 = vld [vmem:[%s6643_s2 + $0x630] sm:$0xff]  }
 0x303   :  { %4806 = vmatpush3.bf16.msra.mxu1 %v5137_v26  ;;  %4817 = vmatprep.mubr.bf16.mxu1 %v6094_v28  ;;  %v5143_v26 = vld [vmem:[%s6644_s3] sm:$0xff]  }
 0x304   :  { %4807 = vmatprep.subr.bf16.mxu1 %v5138_v11  ;;  %4822 = vmatpush3.bf16.msra.mxu0 %v5143_v26 }
 0x305   :  { %4823 = vmatprep.subr.bf16.mxu0 %v5159_v35 }
 0x307   :  { %4808 = vmatpush3.bf16.msra.mxu1 %v5138_v11  ;;  %v5145_v11 = vld [vmem:[%s6644_s3 + $0x10] sm:$0xff]  }
 0x308   :  { %4809 = vmatprep.subr.bf16.mxu1 %v5139_v21  ;;  %4824 = vmatpush3.bf16.msra.mxu0 %v5144_v14 }
 0x309   :  { %4825 = vmatprep.subr.bf16.mxu0 %v5159_v35 }
 0x30b   :  { %4810 = vmatpush3.bf16.msra.mxu1 %v5139_v21  ;;  %v5146_v21 = vld [vmem:[%s6644_s3 + $0x18] sm:$0xff]  }
 0x30c   :  { %4811 = vmatprep.subr.bf16.mxu1 %v5140_v16  ;;  %4826 = vmatpush3.bf16.msra.mxu0 %v5145_v11 }
 0x30d   :  { %v4377_v19 = vpop.f32.mrb[24].mxu1  ;;  %4827 = vmatprep.subr.bf16.mxu0 %v5159_v35 }
 0x30e   :  { %v4378_v12 = vpop.f32.mrb[25].mxu1 }
 0x30f   :  { %v4379_v28 = vadd.f32 %v4378_v12, %v4377_v19  ;;  %v4380_v30 = vpop.f32.mrb[26].mxu1  ;;  %4812 = vmatpush3.bf16.msra.mxu1 %v5140_v16  ;;  %v5147_v16 = vld [vmem:[%s6644_s3 + $0x20] sm:$0xff]   ;;  %v5148_v12 = vld [vmem:[%s6644_s3 + $0x28] sm:$0xff]  }
 0x310   :  { %v4381_v3 = vpop.f32.mrb[27].mxu1  ;;  %4813 = vmatprep.subr.bf16.mxu1 %v5141_v34  ;;  %4828 = vmatpush3.bf16.msra.mxu0 %v5146_v21 }
 0x311   :  { %v3226_v44 = vadd.f32 %v4379_v28, %v3177_v61  ;;  %v4382_v60 = vadd.f32 %v4381_v3, %v4380_v30  ;;  %4829 = vmatprep.subr.bf16.mxu0 %v5159_v35 }
 0x313   :  { %v3229_v41 = vadd.f32 %v4382_v60, %v3180_v45  ;;  %4814 = vmatpush3.bf16.msra.mxu1 %v5141_v34  ;;  %v5149_v60 = vld [vmem:[%s6644_s3 + $0x30] sm:$0xff]  }
 0x314   :  { %4815 = vmatprep.subr.bf16.mxu1 %v5142_v59  ;;  %4830 = vmatpush3.bf16.msra.mxu0 %v5147_v16 }
 0x315   :  { %v4383_v62 = vpop.f32.mrb[28].mxu1  ;;  %4831 = vmatprep.subr.bf16.mxu0 %v5159_v35 }
 0x316   :  { %v4384_v0 = vpop.f32.mrb[29].mxu1 }
 0x317   :  { %v4385_v25 = vadd.f32 %v4384_v0, %v4383_v62  ;;  %v4386_v24 = vpop.f32.mrb[30].mxu1  ;;  %4816 = vmatpush3.bf16.msra.mxu1 %v5142_v59 }
 0x318   :  { %v4387_v1 = vpop.f32.mrb[31].mxu1  ;;  %4841 = vmatprep.subr.bf16.mxu1 %v5159_v35  ;;  %4832 = vmatpush3.bf16.msra.mxu0 %v5148_v12 }
 0x319   :  { %v3234_v5 = vadd.f32 %v4385_v25, %v3185_v56  ;;  %v4388_v17 = vadd.f32 %v4387_v1, %v4386_v24  ;;  %4833 = vmatprep.subr.bf16.mxu0 %v5159_v35  ;;  %v5150_v25 = vld [vmem:[%s6644_s3 + $0x38] sm:$0xff]  }
 0x31a   :  { %4818 = vmatmul.mubr.bf16.vlgmr.msra.gmra.mrb[80].mxu1 %v6134_v22 }
 0x31b   :  { %v3237_v48 = vadd.f32 %v4388_v17, %v3188_v36  ;;  %4857 = vmatprep.mubr.msk.bf16.mxu1 %vm5160_vm0, %v5159_v35 }
 0x31c   :  { %4834 = vmatpush3.bf16.msra.mxu0 %v5149_v60 }
 0x31d   :  { %4835 = vmatprep.subr.bf16.mxu0 %v5159_v35 }
 0x320   :  { %4836 = vmatpush3.bf16.msra.mxu0 %v5150_v25 }
 0x32d   :  { %v4405_v40 = vpop.f32.mrb[32].mxu1 }
 0x32e   :  { %v4406_v7 = vpop.f32.mrb[33].mxu1 }
 0x32f   :  { %v4407_v18 = vadd.f32 %v4406_v7, %v4405_v40  ;;  %v4408_v52 = vpop.f32.mrb[34].mxu1  ;;  %v5151_v7 = vld [vmem:[%s6645_s4] sm:$0xff]  }
 0x330   :  { %v4409_v39 = vpop.f32.mrb[35].mxu1  ;;  %4842 = vmatpush3.bf16.msra.mxu1 %v5151_v7 }
 0x331   :  { %v3275_v47 = vadd.f32 %v4407_v18, %v3226_v44  ;;  %v4410_v6 = vadd.f32 %v4409_v39, %v4408_v52  ;;  %v5152_v18 = vld [vmem:[%s6645_s4 + $0x8] sm:$0xff]   ;;  %4843 = vmatprep.subr.bf16.mxu1 %v5159_v35  ;;  %v5153_v52 = vld [vmem:[%s6645_s4 + $0x10] sm:$0xff]   ;;  %v5154_v39 = vld [vmem:[%s6645_s4 + $0x18] sm:$0xff]  }
 0x333   :  { %v3278_v20 = vadd.f32 %v4410_v6, %v3229_v41 }
 0x334   :  { %4844 = vmatpush3.bf16.msra.mxu1 %v5152_v18 }
 0x335   :  { %v4411_v53 = vpop.f32.mrb[36].mxu1  ;;  %4845 = vmatprep.subr.bf16.mxu1 %v5159_v35 }
 0x336   :  { %v4412_v38 = vpop.f32.mrb[37].mxu1 }
 0x337   :  { %v4413_v33 = vadd.f32 %v4412_v38, %v4411_v53  ;;  %v4414_v61 = vpop.f32.mrb[38].mxu1  ;;  %v5156_v53 = vld [vmem:[%s6645_s4 + $0x28] sm:$0xff]  }
 0x338   :  { %v4415_v49 = vpop.f32.mrb[39].mxu1  ;;  %4846 = vmatpush3.bf16.msra.mxu1 %v5153_v52 }
 0x339   :  { %v3283_v45 = vadd.f32 %v4413_v33, %v3234_v5  ;;  %v4416_v37 = vadd.f32 %v4415_v49, %v4414_v61  ;;  %4847 = vmatprep.subr.bf16.mxu1 %v5159_v35 }
 0x33b   :  { %v3286_v32 = vadd.f32 %v4416_v37, %v3237_v48  ;;  %v5157_v37 = vld [vmem:[%s6645_s4 + $0x30] sm:$0xff]  }
 0x33c   :  { %4848 = vmatpush3.bf16.msra.mxu1 %v5154_v39 }
 0x33d   :  { %4849 = vmatprep.subr.bf16.mxu1 %v5159_v35 }
 0x34d   :  { %v4433_v51 = vpop.f32.mrb[40].mxu1 }
 0x34e   :  { %v4434_v2 = vpop.f32.mrb[41].mxu1 }
 0x34f   :  { %v4435_v22 = vadd.f32 %v4434_v2, %v4433_v51  ;;  %v4436_v8 = vpop.f32.mrb[42].mxu1 }
 0x350   :  { %v4437_v43 = vpop.f32.mrb[43].mxu1 }
 0x351   :  { %v3324_v9 = vadd.f32 %v4435_v22, %v3275_v47  ;;  %v4438_v42 = vadd.f32 %v4437_v43, %v4436_v8  ;;  %v5155_v47 = vld [vmem:[%s6645_s4 + $0x20] sm:$0xff]  }
 0x352   :  { %4850 = vmatpush3.bf16.msra.mxu1 %v5155_v47 }
 0x353   :  { %v3327_v29 = vadd.f32 %v4438_v42, %v3278_v20  ;;  %4851 = vmatprep.subr.bf16.mxu1 %v5159_v35 }
 0x355   :  { %v4439_v27 = vpop.f32.mrb[44].mxu1 }
 0x356   :  { %v4440_v10 = vpop.f32.mrb[45].mxu1  ;;  %4852 = vmatpush3.bf16.msra.mxu1 %v5156_v53 }
 0x357   :  { %v4441_v63 = vadd.f32 %v4440_v10, %v4439_v27  ;;  %v4442_v56 = vpop.f32.mrb[46].mxu1  ;;  %4853 = vmatprep.subr.bf16.mxu1 %v5159_v35 }
 0x358   :  { %v4443_v55 = vpop.f32.mrb[47].mxu1 }
 0x359   :  { %v3332_v36 = vadd.f32 %v4441_v63, %v3283_v45  ;;  %v4444_v58 = vadd.f32 %v4443_v55, %v4442_v56 }
 0x35a   :  { %4854 = vmatpush3.bf16.msra.mxu1 %v5157_v37 }
 0x35b   :  { %v3335_v23 = vadd.f32 %v4444_v58, %v3286_v32  ;;  %4855 = vmatprep.subr.bf16.mxu1 %v5159_v35 }
 0x36d   :  { %v4461_v34 = vpop.f32.mrb[48].mxu1 }
 0x36e   :  { %v4462_v19 = vpop.f32.mrb[49].mxu1 }
 0x36f   :  { %v4463_v28 = vadd.f32 %v4462_v19, %v4461_v34  ;;  %v4464_v30 = vpop.f32.mrb[50].mxu1 }
 0x370   :  { %v4465_v3 = vpop.f32.mrb[51].mxu1 }
 0x371   :  { %v3373_v59 = vadd.f32 %v4463_v28, %v3324_v9  ;;  %v4466_v44 = vadd.f32 %v4465_v3, %v4464_v30 }
 0x373   :  { %v3376_v41 = vadd.f32 %v4466_v44, %v3327_v29 }
 0x375   :  { %v4467_v62 = vpop.f32.mrb[52].mxu1 }
 0x376   :  { %v4468_v0 = vpop.f32.mrb[53].mxu1 }
 0x377   :  { %v4469_v24 = vadd.f32 %v4468_v0, %v4467_v62  ;;  %v4470_v1 = vpop.f32.mrb[54].mxu1 }
 0x378   :  { %v4471_v5 = vpop.f32.mrb[55].mxu1 }
 0x379   :  { %v3381_v17 = vadd.f32 %v4469_v24, %v3332_v36  ;;  %v4472_v48 = vadd.f32 %v4471_v5, %v4470_v1 }
 0x37b   :  { %v3384_v40 = vadd.f32 %v4472_v48, %v3335_v23 }
 0x38d   :  { %v4489_v6 = vpop.f32.mrb[56].mxu1 }
 0x38e   :  { %v4490_v20 = vpop.f32.mrb[57].mxu1 }
 0x38f   :  { %v4491_v38 = vadd.f32 %v4490_v20, %v4489_v6  ;;  %v4492_v33 = vpop.f32.mrb[58].mxu1 }
 0x390   :  { %v4493_v61 = vpop.f32.mrb[59].mxu1 }
 0x391   :  { %v3422_v49 = vadd.f32 %v4491_v38, %v3373_v59  ;;  %v4494_v45 = vadd.f32 %v4493_v61, %v4492_v33 }
 0x393   :  { %v3425_v32 = vadd.f32 %v4494_v45, %v3376_v41 }
 0x395   :  { %v4495_v51 = vpop.f32.mrb[60].mxu1 }
 0x396   :  { %v4496_v2 = vpop.f32.mrb[61].mxu1 }
 0x397   :  { %v4497_v22 = vadd.f32 %v4496_v2, %v4495_v51  ;;  %v4498_v8 = vpop.f32.mrb[62].mxu1 }
 0x398   :  { %v4499_v43 = vpop.f32.mrb[63].mxu1 }
 0x399   :  { %v3430_v9 = vadd.f32 %v4497_v22, %v3381_v17  ;;  %v4500_v42 = vadd.f32 %v4499_v43, %v4498_v8 }
 0x39b   :  { %v3433_v29 = vadd.f32 %v4500_v42, %v3384_v40 }
 0x3ad   :  { %v4517_v27 = vpop.f32.mrb[64].mxu1 }
 0x3ae   :  { %v4518_v10 = vpop.f32.mrb[65].mxu1 }
 0x3af   :  { %v4519_v63 = vadd.f32 %v4518_v10, %v4517_v27  ;;  %v4520_v56 = vpop.f32.mrb[66].mxu1 }
 0x3b0   :  { %v4521_v55 = vpop.f32.mrb[67].mxu1 }
 0x3b1   :  { %v3471_v36 = vadd.f32 %v4519_v63, %v3422_v49  ;;  %v4522_v58 = vadd.f32 %v4521_v55, %v4520_v56 }
 0x3b3   :  { %v3474_v26 = vadd.f32 %v4522_v58, %v3425_v32  ;;  %v3520_v23 = vadd.f32 %v6462_v57, %v3471_v36 }
 0x3b5   :  { %v4523_v14 = vpop.f32.mrb[68].mxu1  ;;  %v3523_v11 = vadd.f32 %v6467_v31, %v3474_v26 }
 0x3b6   :  { %v4524_v21 = vpop.f32.mrb[69].mxu1 }
 0x3b7   :  { %v4525_v16 = vadd.f32 %v4524_v21, %v4523_v14  ;;  %v4526_v35 = vpop.f32.mrb[70].mxu1 }
 0x3b8   :  { %v4527_v34 = vpop.f32.mrb[71].mxu1 }
 0x3b9   :  { %v3479_v19 = vadd.f32 %v4525_v16, %v3430_v9  ;;  %v4528_v12 = vadd.f32 %v4527_v34, %v4526_v35 }
 0x3bb   :  { %v3482_v28 = vadd.f32 %v4528_v12, %v3433_v29  ;;  %v3528_v30 = vadd.f32 %v6501_v46, %v3479_v19 }
 0x3bd   :  { %v3531_v3 = vadd.f32 %v6506_v15, %v3482_v28 }
 0x3cd   :  { %v4573_v59 = vpop.f32.mrb[72].mxu1 }
 0x3ce   :  { %v4574_v44 = vpop.f32.mrb[73].mxu1 }
 0x3cf   :  { %v4575_v60 = vadd.f32 %v4574_v44, %v4573_v59  ;;  %v4576_v41 = vpop.f32.mrb[74].mxu1 }
 0x3d0   :  { %v4577_v62 = vpop.f32.mrb[75].mxu1 }
 0x3d1   :  { %v3569_v57 = vadd.f32 %v4575_v60, %v3520_v23  ;;  %v4578_v0 = vadd.f32 %v4577_v62, %v4576_v41 }
 0x3d3   :  { %v3572_v25 = vadd.f32 %v4578_v0, %v3523_v11  ;;  %v3618_v31 = vadd.f32 %v6528_v50, %v3569_v57 }
 0x3d5   :  { %v4579_v24 = vpop.f32.mrb[76].mxu1  ;;  %v3621_v1 = vadd.f32 %v6530_v13, %v3572_v25 }
 0x3d6   :  { %v4580_v5 = vpop.f32.mrb[77].mxu1 }
 0x3d7   :  { %v4581_v17 = vadd.f32 %v4580_v5, %v4579_v24  ;;  %v4582_v48 = vpop.f32.mrb[78].mxu1 }
 0x3d8   :  { %v4583_v40 = vpop.f32.mrb[79].mxu1 }
 0x3d9   :  { %v3577_v46 = vadd.f32 %v4581_v17, %v3528_v30  ;;  %v4584_v7 = vadd.f32 %v4583_v40, %v4582_v48 }
 0x3db   :  { %v3580_v15 = vadd.f32 %v4584_v7, %v3531_v3  ;;  %v3626_v18 = vadd.f32 %v6542_v54, %v3577_v46  ;;  %v5158_v54 = vld [vmem:[%s6645_s4 + $0x38] sm:$0xff]  }
 0x3dc   :  { %4856 = vmatpush3.bf16.msra.mxu1 %v5158_v54 }
 0x3dd   :  { %v3629_v52 = vadd.f32 %v6544_v4, %v3580_v15 }
 0x3ed   :  { %v4819_v39 = vpop.f32.mrb[80].mxu1 }
 0x3ee   :  { %v3675_v47 = vadd.f32 %v4819_v39, %v3626_v18  ;;  %v3666_v6 = vpop.f32.mrb[81].mxu1 }
 0x3ef   :  { %v3667_v20 = vadd.f32 %v3666_v6, %v3618_v31  ;;  %v4820_v53 = vpop.f32.mrb[82].mxu1 }
 0x3f0   :  { %v3678_v50 = vadd.f32 %v4820_v53, %v3629_v52  ;;  %v3669_v38 = vpop.f32.mrb[83].mxu1 }
 0x3f1   :  { %v3670_v33 = vadd.f32 %v3669_v38, %v3621_v1 }
 0x3f2   :  { %v3682_v13 = vmax.f32 %v3675_v47, %v3678_v50 }
 0x3f3   :  { %v3681_v61 = vmax.f32 %v3667_v20, %v3670_v33 }
 0x3f5   :  { %v3683_v49 = vmax.f32 %v3681_v61, %v3682_v13 }
 0x3f7   :  { %v3684_v45 = vmax.f32 %v3683_v49, 0.0 }
 0x3f9   :  { %v3685_v37 = vpack.c.bf16 %v3684_v45, %v3684_v45 }
 0x3fb   :  { %4838 = vmatmul.mubr.bf16.vlgmr.msra.gmra.mrb[160].mxu0 %v3685_v37 }
 0x4ce   :  { %v3784_v4 = vpop.f32.mrb[160].mxu0 }
 0x4cf   :  { %v3790_v32 = vmax.f32 %v3784_v4, 0.0  ;;  %v4839_v51 = vpop.f32.mrb[161].mxu0 }
 0x4d0   :  { %v3787_v2 = vpop.f32.mrb[162].mxu0 }
 0x4d1   :  { %v3791_v22 = vpack.c.bf16 %v3790_v32, %v3790_v32  ;;  %v4840_v8 = vpop.f32.mrb[163].mxu0 }
 0x4d3   :  { %4858 = vmatmul.mubr.bf16.vlgmr.msra.gmra.mrb[84].mxu1 %v3791_v22 }
 0x5a6   :  { %v3890_v43 = vpop.f32.mrb[84].mxu1 }
 0x5a7   :  { %3896 = vst [vmem:[%s6646_s5] sm:$0xff] %v3890_v43  ;;  %v4859_v9 = vpop.f32.mrb[85].mxu1 }
 0x5a8   :  { %v3893_v42 = vpop.f32.mrb[86].mxu1 }
 0x5a9   :  { %v4860_v29 = vpop.f32.mrb[87].mxu1 }

</bundles_post_ra>
